<compile_context>
chip_gen: v7x
topology: tpu7x:2x2x1
jax: 0.10.0
libtpu: 0.0.40
codegen_flags: <defaults>
</compile_context>

<pallas_src>
import jax
import jax.numpy as jnp
from jax.experimental import pallas as pl
from jax.experimental.pallas import tpu as pltpu


def _round_up(x, m):
    return ((x + m - 1) // m) * m


# ---------------------------------------------------------------------------
# Fused 3-layer MLP kernel: out = sigmoid(relu(relu(x@W1+b1)@W2+b2)@W3+b3)
# ---------------------------------------------------------------------------
def _mlp_kernel(x_ref, w1_ref, b1_ref, w2_ref, b2_ref, w3_ref, b3_ref, o_ref):
    # bf16 operands, f32 accumulation on the MXU.
    x = x_ref[...].astype(jnp.bfloat16)
    h1 = jnp.dot(x, w1_ref[...], preferred_element_type=jnp.float32)
    h1 = jnp.maximum(h1 + b1_ref[...], 0.0).astype(jnp.bfloat16)

    h2 = jnp.dot(h1, w2_ref[...], preferred_element_type=jnp.float32)
    h2 = jnp.maximum(h2 + b2_ref[...], 0.0).astype(jnp.bfloat16)

    z3 = jnp.dot(h2, w3_ref[...], preferred_element_type=jnp.float32)
    z3 = z3 + b3_ref[...]

    # sigmoid(z) == 0.5*tanh(0.5*z) + 0.5 : one EUP op, no overflow to 0/1.
    o_ref[...] = (0.5 * jnp.tanh(0.5 * z3) + 0.5).astype(o_ref.dtype)


def mnist_generator_forward(params, x, *, tb_max=1024):
    """x: [B, input_dim] f32 -> [B, output_dim] f32 (sigmoid outputs)."""
    w1, b1 = params["fc1_w"], params["fc1_b"]   # [K1p, 256] bf16, [1, 256] f32
    w2, b2 = params["fc2_w"], params["fc2_b"]   # [256, 1024] bf16, [1, 1024]
    w3, b3 = params["fc3_w"], params["fc3_b"]   # [1024, N]  bf16, [1, N]

    B, K1 = x.shape
    K1p, H1 = w1.shape
    H2, N = w2.shape[1], w3.shape[1]
    assert K1 <= K1p and w2.shape[0] == H1 and w3.shape[0] == H2

    # Zero-pad the feature dim once (100 -> 128): lane-dense x tile, full MXU
    # K tile for layer 1 (the padded weight rows are zero, so math is exact).
    if K1 < K1p:
        x = jnp.pad(x, ((0, 0), (0, K1p - K1)))

    # Waste-aware batch tile: choose the number of grid steps first, then the
    # smallest 8-aligned tile covering B.  >=2 steps (when B >= 16) keeps both
    # v7x TensorCores busy via the "parallel" batch axis.
    min_steps = 2 if B >= 16 else 1
    steps = max(pl.cdiv(B, tb_max), min_steps)
    tb = _round_up(pl.cdiv(B, steps), 8)
    Bp = steps * tb
    xp = x if Bp == B else jnp.pad(x, ((0, Bp - B), (0, 0)))

    # Grid-invariant operands: single-buffer (constant index_map => the second
    # pipeline buffer is pure VMEM waste).
    resident = dict(pipeline_mode=pl.Buffered(buffer_count=1))

    out = pl.pallas_call(
        _mlp_kernel,
        out_shape=jax.ShapeDtypeStruct((Bp, N), jnp.float32),
        grid_spec=pltpu.PrefetchScalarGridSpec(
            num_scalar_prefetch=0,
            grid=(steps,),
            in_specs=[
                pl.BlockSpec((tb, K1p), lambda i: (i, 0)),              # x tile
                pl.BlockSpec((K1p, H1), lambda i: (0, 0), **resident),  # W1
                pl.BlockSpec((1, H1),   lambda i: (0, 0), **resident),  # b1
                pl.BlockSpec((H1, H2),  lambda i: (0, 0), **resident),  # W2
                pl.BlockSpec((1, H2),   lambda i: (0, 0), **resident),  # b2
                pl.BlockSpec((H2, N),   lambda i: (0, 0), **resident),  # W3
                pl.BlockSpec((1, N),    lambda i: (0, 0), **resident),  # b3
            ],
            out_specs=pl.BlockSpec((tb, N), lambda i: (i, 0)),
        ),
        compiler_params=pltpu.CompilerParams(
            dimension_semantics=("parallel",),
            vmem_limit_bytes=48 * 1024 * 1024,
        ),
    )(xp, w1, b1, w2, b2, w3, b3)

    return out if Bp == B else out[:B]


# ---------------------------------------------------------------------------
# Parameters: xavier-normal weights, stored pre-transposed [K, N] in bf16,
# with fc1's fan-in zero-padded to a lane multiple (100 -> 128).
# Biases are zero, kept f32 and shaped [1, N] (2-D VMEM blocks).
# ---------------------------------------------------------------------------
def init_params(key, input_dim=100, output_dim=784):
    ks = jax.random.split(key, 3)

    def xavier(k, fan_in, fan_out):
        std = jnp.sqrt(2.0 / (fan_in + fan_out))
        return jax.random.normal(k, (fan_in, fan_out), jnp.float32) * std

    k1p = _round_up(input_dim, 128)
    w1 = xavier(ks[0], input_dim, 256)                  # std uses the true fan-in
    w1 = jnp.pad(w1, ((0, k1p - input_dim), (0, 0)))    # zero rows for the pad

    return {
        "fc1_w": w1.astype(jnp.bfloat16),
        "fc1_b": jnp.zeros((1, 256), jnp.float32),
        "fc2_w": xavier(ks[1], 256, 1024).astype(jnp.bfloat16),
        "fc2_b": jnp.zeros((1, 1024), jnp.float32),
        "fc3_w": xavier(ks[2], 1024, output_dim).astype(jnp.bfloat16),
        "fc3_b": jnp.zeros((1, output_dim), jnp.float32),
    }


# Pure-JAX reference with identical dtype handling (for correctness checking).
def reference_forward(params, x):
    w1, b1 = params["fc1_w"], params["fc1_b"]
    w2, b2 = params["fc2_w"], params["fc2_b"]
    w3, b3 = params["fc3_w"], params["fc3_b"]
    x = jnp.pad(x, ((0, 0), (0, w1.shape[0] - x.shape[1])))
    h1 = jnp.maximum(jnp.dot(x.astype(jnp.bfloat16), w1,
                             preferred_element_type=jnp.float32) + b1, 0.0)
    h2 = jnp.maximum(jnp.dot(h1.astype(jnp.bfloat16), w2,
                             preferred_element_type=jnp.float32) + b2, 0.0)
    z3 = jnp.dot(h2.astype(jnp.bfloat16), w3,
                 preferred_element_type=jnp.float32) + b3
    return jax.nn.sigmoid(z3)


if __name__ == "__main__":
    key = jax.random.PRNGKey(0)
    pkey, xkey = jax.random.split(key)

    input_dim, output_dim, batch = 100, 784, 8
    params = init_params(pkey, input_dim=input_dim, output_dim=output_dim)
    x = jax.random.normal(xkey, (batch, input_dim), jnp.float32)

    fwd = jax.jit(mnist_generator_forward)
    out = jax.block_until_ready(fwd(params, x))

    assert out.shape == (batch, output_dim) and out.dtype == jnp.float32
    # sigmoid output must be strictly inside (0, 1)
    assert bool(jnp.all(out > 0.0)) and bool(jnp.all(out < 1.0))

    # Match the pure-JAX reference (same bf16 dots, f32 accumulation).
    ref = jax.block_until_ready(jax.jit(reference_forward)(params, x))
    assert float(jnp.max(jnp.abs(out - ref))) < 3e-2

    print("KERNEL_OK")
</pallas_src>

<mosaic_0001>
module attributes {stable_mosaic.version = 11 : i64} {
  func.func @_mlp_kernel(%arg0: i32, %arg1: memref<8x128xf32, #tpu.memory_space<vmem>>, %arg2: memref<128x256xbf16, #tpu.memory_space<vmem>>, %arg3: memref<1x256xf32, #tpu.memory_space<vmem>>, %arg4: memref<256x1024xbf16, #tpu.memory_space<vmem>>, %arg5: memref<1x1024xf32, #tpu.memory_space<vmem>>, %arg6: memref<1024x784xbf16, #tpu.memory_space<vmem>>, %arg7: memref<1x784xf32, #tpu.memory_space<vmem>>, %arg8: memref<8x784xf32, #tpu.memory_space<vmem>>) attributes {dimension_semantics = [#tpu.dimension_semantics<parallel>], iteration_bounds = array<i64: 1>, scalar_prefetch = 0 : i64, scratch_operands = 0 : i64, tpu.core_type = #tpu.core_type<tc>, window_params = [{transform_indices = @transform_0, window_bounds = array<i64: 8, 128>}, {pipeline_mode = #tpu.pipeline_mode<synchronous>, transform_indices = @transform_1, window_bounds = array<i64: 128, 256>}, {pipeline_mode = #tpu.pipeline_mode<synchronous>, transform_indices = @transform_2, window_bounds = array<i64: 1, 256>}, {pipeline_mode = #tpu.pipeline_mode<synchronous>, transform_indices = @transform_3, window_bounds = array<i64: 256, 1024>}, {pipeline_mode = #tpu.pipeline_mode<synchronous>, transform_indices = @transform_4, window_bounds = array<i64: 1, 1024>}, {pipeline_mode = #tpu.pipeline_mode<synchronous>, transform_indices = @transform_5, window_bounds = array<i64: 1024, 784>}, {pipeline_mode = #tpu.pipeline_mode<synchronous>, transform_indices = @transform_6, window_bounds = array<i64: 1, 784>}, {transform_indices = @transform_7, window_bounds = array<i64: 8, 784>}]} {
    %c0 = arith.constant 0 : index
    %c0_0 = arith.constant 0 : index
    %0 = vector.load %arg1[%c0, %c0_0] : memref<8x128xf32, #tpu.memory_space<vmem>>, vector<8x128xf32>
    %1 = arith.truncf %0 : vector<8x128xf32> to vector<8x128xbf16>
    %c0_1 = arith.constant 0 : index
    %c0_2 = arith.constant 0 : index
    %2 = vector.load %arg2[%c0_1, %c0_2] : memref<128x256xbf16, #tpu.memory_space<vmem>>, vector<128x256xbf16>
    %cst = arith.constant dense<0.000000e+00> : vector<8x256xf32>
    %3 = tpu.matmul %1, %2, %cst {dimension_numbers = #tpu.dot_dimension_numbers<[1], [0], [0], [1], [0, 0, 1, 1], [], []>} : vector<8x128xbf16>, vector<128x256xbf16>, vector<8x256xf32> -> vector<8x256xf32>
    %c0_3 = arith.constant 0 : index
    %c0_4 = arith.constant 0 : index
    %4 = vector.load %arg3[%c0_3, %c0_4] : memref<1x256xf32, #tpu.memory_space<vmem>>, vector<1x256xf32>
    %5 = vector.broadcast %4 : vector<1x256xf32> to vector<8x256xf32>
    %6 = arith.addf %3, %5 : vector<8x256xf32>
    %cst_5 = arith.constant 0.000000e+00 : f32
    %7 = vector.broadcast %cst_5 : f32 to vector<8x256xf32>
    %8 = arith.maximumf %6, %7 : vector<8x256xf32>
    %9 = arith.truncf %8 : vector<8x256xf32> to vector<8x256xbf16>
    %c0_6 = arith.constant 0 : index
    %c0_7 = arith.constant 0 : index
    %10 = vector.load %arg4[%c0_6, %c0_7] : memref<256x1024xbf16, #tpu.memory_space<vmem>>, vector<256x1024xbf16>
    %cst_8 = arith.constant dense<0.000000e+00> : vector<8x1024xf32>
    %11 = tpu.matmul %9, %10, %cst_8 {dimension_numbers = #tpu.dot_dimension_numbers<[1], [0], [0], [1], [0, 0, 1, 1], [], []>} : vector<8x256xbf16>, vector<256x1024xbf16>, vector<8x1024xf32> -> vector<8x1024xf32>
    %c0_9 = arith.constant 0 : index
    %c0_10 = arith.constant 0 : index
    %12 = vector.load %arg5[%c0_9, %c0_10] : memref<1x1024xf32, #tpu.memory_space<vmem>>, vector<1x1024xf32>
    %13 = vector.broadcast %12 : vector<1x1024xf32> to vector<8x1024xf32>
    %14 = arith.addf %11, %13 : vector<8x1024xf32>
    %cst_11 = arith.constant 0.000000e+00 : f32
    %15 = vector.broadcast %cst_11 : f32 to vector<8x1024xf32>
    %16 = arith.maximumf %14, %15 : vector<8x1024xf32>
    %17 = arith.truncf %16 : vector<8x1024xf32> to vector<8x1024xbf16>
    %c0_12 = arith.constant 0 : index
    %c0_13 = arith.constant 0 : index
    %18 = vector.load %arg6[%c0_12, %c0_13] : memref<1024x784xbf16, #tpu.memory_space<vmem>>, vector<1024x784xbf16>
    %cst_14 = arith.constant dense<0.000000e+00> : vector<8x784xf32>
    %19 = tpu.matmul %17, %18, %cst_14 {dimension_numbers = #tpu.dot_dimension_numbers<[1], [0], [0], [1], [0, 0, 1, 1], [], []>} : vector<8x1024xbf16>, vector<1024x784xbf16>, vector<8x784xf32> -> vector<8x784xf32>
    %c0_15 = arith.constant 0 : index
    %c0_16 = arith.constant 0 : index
    %20 = vector.load %arg7[%c0_15, %c0_16] : memref<1x784xf32, #tpu.memory_space<vmem>>, vector<1x784xf32>
    %21 = vector.broadcast %20 : vector<1x784xf32> to vector<8x784xf32>
    %22 = arith.addf %19, %21 : vector<8x784xf32>
    %cst_17 = arith.constant 5.000000e-01 : f32
    %23 = vector.broadcast %cst_17 : f32 to vector<8x784xf32>
    %24 = arith.mulf %23, %22 : vector<8x784xf32>
    %25 = math.tanh %24 : vector<8x784xf32>
    %cst_18 = arith.constant 5.000000e-01 : f32
    %26 = vector.broadcast %cst_18 : f32 to vector<8x784xf32>
    %27 = arith.mulf %26, %25 : vector<8x784xf32>
    %cst_19 = arith.constant 5.000000e-01 : f32
    %28 = vector.broadcast %cst_19 : f32 to vector<8x784xf32>
    %29 = arith.addf %27, %28 : vector<8x784xf32>
    %c0_20 = arith.constant 0 : index
    %c0_21 = arith.constant 0 : index
    %30 = vector.load %arg8[%c0_20, %c0_21] : memref<8x784xf32, #tpu.memory_space<vmem>>, vector<8x784xf32>
    tpu.vector_store %arg8[%c0_20, %c0_21], %29 {strides = array<i32>} : memref<8x784xf32, #tpu.memory_space<vmem>>, vector<8x784xf32>,
    return
  }
  func.func @transform_0(%arg0: i32) -> (i32, i32) {
    %c0_i32 = arith.constant 0 : i32
    %c0_i32_0 = arith.constant 0 : i32
    return %arg0, %c0_i32 : i32, i32
  }
  func.func @transform_1(%arg0: i32) -> (i32, i32) {
    %c0_i32 = arith.constant 0 : i32
    %c0_i32_0 = arith.constant 0 : i32
    %c0_i32_1 = arith.constant 0 : i32
    return %c0_i32, %c0_i32_0 : i32, i32
  }
  func.func @transform_2(%arg0: i32) -> (i32, i32) {
    %c0_i32 = arith.constant 0 : i32
    %c0_i32_0 = arith.constant 0 : i32
    %c0_i32_1 = arith.constant 0 : i32
    return %c0_i32, %c0_i32_0 : i32, i32
  }
  func.func @transform_3(%arg0: i32) -> (i32, i32) {
    %c0_i32 = arith.constant 0 : i32
    %c0_i32_0 = arith.constant 0 : i32
    %c0_i32_1 = arith.constant 0 : i32
    return %c0_i32, %c0_i32_0 : i32, i32
  }
  func.func @transform_4(%arg0: i32) -> (i32, i32) {
    %c0_i32 = arith.constant 0 : i32
    %c0_i32_0 = arith.constant 0 : i32
    %c0_i32_1 = arith.constant 0 : i32
    return %c0_i32, %c0_i32_0 : i32, i32
  }
  func.func @transform_5(%arg0: i32) -> (i32, i32) {
    %c0_i32 = arith.constant 0 : i32
    %c0_i32_0 = arith.constant 0 : i32
    %c0_i32_1 = arith.constant 0 : i32
    return %c0_i32, %c0_i32_0 : i32, i32
  }
  func.func @transform_6(%arg0: i32) -> (i32, i32) {
    %c0_i32 = arith.constant 0 : i32
    %c0_i32_0 = arith.constant 0 : i32
    %c0_i32_1 = arith.constant 0 : i32
    return %c0_i32, %c0_i32_0 : i32, i32
  }
  func.func @transform_7(%arg0: i32) -> (i32, i32) {
    %c0_i32 = arith.constant 0 : i32
    %c0_i32_0 = arith.constant 0 : i32
    return %arg0, %c0_i32 : i32, i32
  }
}

</mosaic_0001>

<bundles_post_ra>
// kernel: mnist_generator_forward.1
= control target key start
LH: loop header
LB: loop body
LE: loop exit
PB: predicated region body
PF: predicated region fallthrough
CT: control target
= control target key end

     0   :  { %v6154_v2 = vmov 0   ;;  %s8124_s0 = inlined_call_operand.vmem [shape: f32[8,128], index: 0, kind: input, shape index: {}]   ;;  %s8125_s1 = inlined_call_operand.vmem [shape: bf16[128,256], index: 1, kind: input, shape index: {}]   ;;  %s8126_s2 = inlined_call_operand.vmem [shape: f32[1,256], index: 2, kind: input, shape index: {}]   ;;  %s8127_s3 = inlined_call_operand.vmem [shape: bf16[256,1024], index: 3, kind: input, shape index: {}]   ;;  %s8128_s4 = inlined_call_operand.vmem [shape: f32[1,1024], index: 4, kind: input, shape index: {}]   ;;  %s8129_s5 = inlined_call_operand.vmem [shape: bf16[1024,784], index: 5, kind: input, shape index: {}]   ;;  %s8130_s6 = inlined_call_operand.vmem [shape: f32[1,784], index: 6, kind: input, shape index: {}]   ;;  %s8131_s7 = inlined_call_operand.hbm [shape: f32[8,784], index: 7, kind: output, shape index: {}]  }
   0x1   :  { %v5452_v0 = vld [vmem:[%s8125_s1 + $0x4] ss:$8 sps:$4 sm:$0xff]   ;;  %v5454_v1 = vld [vmem:[%s8125_s1] ss:$8 sps:$4 sm:$0xff]   ;;  %170 = vmatprep.mubr.bf16.mxu0 %v6154_v2  ;;  %v5455_v3 = vld [vmem:[%s8125_s1 + $0x14] ss:$8 sps:$4 sm:$0xff]  }
   0x2   :  { %138 = vmatprep.subr.bf16.mxu0 %v5452_v0  ;;  %v5457_v4 = vld [vmem:[%s8125_s1 + $0x10] ss:$8 sps:$4 sm:$0xff]   ;;  %v5458_v5 = vld [vmem:[%s8125_s1 + $0x24] ss:$8 sps:$4 sm:$0xff]   ;;  %v5460_v6 = vld [vmem:[%s8125_s1 + $0x20] ss:$8 sps:$4 sm:$0xff]  }
   0x3   :  { %139 = vmatpush1.bf16.msra.mxu0 %v5454_v1  ;;  %v5461_v7 = vld [vmem:[%s8125_s1 + $0x34] ss:$8 sps:$4 sm:$0xff]   ;;  %v5463_v8 = vld [vmem:[%s8125_s1 + $0x30] ss:$8 sps:$4 sm:$0xff]   ;;  %v5464_v10 = vld [vmem:[%s8125_s1 + $0x44] ss:$8 sps:$4 sm:$0xff]  }
   0x4   :  { %140 = vmatprep.subr.bf16.mxu0 %v5455_v3  ;;  %v185_v9 = vld [vmem:[%s8127_s3 + $0x10] sm:$0xff]  ;;  %v5466_v19 = vld [vmem:[%s8125_s1 + $0x40] ss:$8 sps:$4 sm:$0xff]   ;;  %v5470_v26 = vld [vmem:[%s8125_s1 + $0x64] ss:$8 sps:$4 sm:$0xff]  }
   0x5   :  { %v189_v11 = vld [vmem:[%s8127_s3 + $0x30] sm:$0xff]  ;;  %v5472_v31 = vld [vmem:[%s8125_s1 + $0x60] ss:$8 sps:$4 sm:$0xff]  }
   0x6   :  { %v4749_v12 = vcombine.high %v185_v9, %v189_v11  ;;  %v4748_v13 = vcombine.low %v185_v9, %v189_v11  ;;  %v193_v14 = vld [vmem:[%s8127_s3 + $0x50] sm:$0xff]  ;;  %v183_v34 = vld [vmem:[%s8127_s3] sm:$0xff] }
   0x7   :  { %141 = vmatpush1.bf16.msra.mxu0 %v5457_v4  ;;  %v197_v15 = vld [vmem:[%s8127_s3 + $0x70] sm:$0xff]  ;;  %v187_v35 = vld [vmem:[%s8127_s3 + $0x20] sm:$0xff] }
   0x8   :  { %142 = vmatprep.subr.bf16.mxu0 %v5458_v5  ;;  %v4757_v16 = vcombine.high %v193_v14, %v197_v15  ;;  %v201_v17 = vld [vmem:[%s8127_s3 + $0x90] sm:$0xff]  ;;  %1075 = vmatprep.subr.bf16.mxu1 %v4749_v12  ;;  %v4756_v21 = vcombine.low %v193_v14, %v197_v15  ;;  %v28_v40 = vld [vmem:[%s8124_s0] sm:$0xff]  ;;  %v4745_v41 = vcombine.high %v183_v34, %v187_v35 }
   0x9   :  { %v205_v18 = vld [vmem:[%s8127_s3 + $0xb0] sm:$0xff]  ;;  %1076 = vmatpush1.bf16.msra.mxu1 %v4748_v13  ;;  %v191_v42 = vld [vmem:[%s8127_s3 + $0x40] sm:$0xff]  ;;  %v29_v48 = vpack.c.bf16 %v28_v40, %v28_v40  ;;  %v4744_v49 = vcombine.low %v183_v34, %v187_v35 }
   0xa   :  { %v5467_v20 = vld [vmem:[%s8125_s1 + $0x54] ss:$8 sps:$4 sm:$0xff]   ;;  %1077 = vmatprep.subr.bf16.mxu1 %v4757_v16  ;;  %v4765_v22 = vcombine.high %v201_v17, %v205_v18  ;;  %v5469_v25 = vld [vmem:[%s8125_s1 + $0x50] ss:$8 sps:$4 sm:$0xff]   ;;  %v4764_v27 = vcombine.low %v201_v17, %v205_v18  ;;  %v195_v44 = vld [vmem:[%s8127_s3 + $0x60] sm:$0xff] }
   0xb   :  { %143 = vmatpush1.bf16.msra.mxu0 %v5460_v6  ;;  %v209_v23 = vld [vmem:[%s8127_s3 + $0xd0] sm:$0xff]  ;;  %v199_v50 = vld [vmem:[%s8127_s3 + $0x80] sm:$0xff]  ;;  %v4753_v52 = vcombine.high %v191_v42, %v195_v44  ;;  %v4752_v57 = vcombine.low %v191_v42, %v195_v44 }
   0xc   :  { %144 = vmatprep.subr.bf16.mxu0 %v5461_v7  ;;  %v213_v24 = vld [vmem:[%s8127_s3 + $0xf0] sm:$0xff]  ;;  %v203_v51 = vld [vmem:[%s8127_s3 + $0xa0] sm:$0xff] }
   0xd   :  { %1078 = vmatpush1.bf16.msra.mxu1 %v4756_v21  ;;  %v4773_v28 = vcombine.high %v209_v23, %v213_v24  ;;  %v217_v29 = vld [vmem:[%s8127_s3 + $0x110] sm:$0xff]  ;;  %v4772_v33 = vcombine.low %v209_v23, %v213_v24  ;;  %v207_v58 = vld [vmem:[%s8127_s3 + $0xc0] sm:$0xff]  ;;  %v4761_v60 = vcombine.high %v199_v50, %v203_v51  ;;  %v4760_v1 = vcombine.low %v199_v50, %v203_v51 }
   0xe   :  { %1079 = vmatprep.subr.bf16.mxu1 %v4765_v22  ;;  %v221_v30 = vld [vmem:[%s8127_s3 + $0x130] sm:$0xff]  ;;  %v211_v59 = vld [vmem:[%s8127_s3 + $0xe0] sm:$0xff] }
   0xf   :  { %145 = vmatpush1.bf16.msra.mxu0 %v5463_v8  ;;  %v5473_v32 = vld [vmem:[%s8125_s1 + $0x74] ss:$8 sps:$4 sm:$0xff]   ;;  %v4781_v36 = vcombine.high %v217_v29, %v221_v30  ;;  %v5475_v39 = vld [vmem:[%s8125_s1 + $0x70] ss:$8 sps:$4 sm:$0xff]   ;;  %v4780_v43 = vcombine.low %v217_v29, %v221_v30  ;;  %v215_v2 = vld [vmem:[%s8127_s3 + $0x100] sm:$0xff]  ;;  %v4769_v4 = vcombine.high %v207_v58, %v211_v59  ;;  %v4768_v9 = vcombine.low %v207_v58, %v211_v59 }
  0x10   :  { %146 = vmatprep.subr.bf16.mxu0 %v5464_v10  ;;  %v225_v37 = vld [vmem:[%s8127_s3 + $0x150] sm:$0xff]  ;;  %v219_v3 = vld [vmem:[%s8127_s3 + $0x120] sm:$0xff] }
  0x11   :  { %1080 = vmatpush1.bf16.msra.mxu1 %v4764_v27  ;;  %v229_v38 = vld [vmem:[%s8127_s3 + $0x170] sm:$0xff]  ;;  %v223_v10 = vld [vmem:[%s8127_s3 + $0x140] sm:$0xff]  ;;  %v4777_v12 = vcombine.high %v215_v2, %v219_v3  ;;  %v4776_v17 = vcombine.low %v215_v2, %v219_v3 }
  0x12   :  { %1081 = vmatprep.subr.bf16.mxu1 %v4773_v28  ;;  %v4789_v45 = vcombine.high %v225_v37, %v229_v38  ;;  %v233_v46 = vld [vmem:[%s8127_s3 + $0x190] sm:$0xff]  ;;  %v4788_v53 = vcombine.low %v225_v37, %v229_v38  ;;  %v227_v11 = vld [vmem:[%s8127_s3 + $0x160] sm:$0xff] }
  0x13   :  { %147 = vmatpush1.bf16.msra.mxu0 %v5466_v19  ;;  %v237_v47 = vld [vmem:[%s8127_s3 + $0x1b0] sm:$0xff]  ;;  %v231_v18 = vld [vmem:[%s8127_s3 + $0x180] sm:$0xff] }
  0x14   :  { %148 = vmatprep.subr.bf16.mxu0 %v5467_v20  ;;  %v241_v54 = vld [vmem:[%s8127_s3 + $0x1d0] sm:$0xff]  ;;  %v4797_v56 = vcombine.high %v233_v46, %v237_v47  ;;  %v4796_v61 = vcombine.low %v233_v46, %v237_v47  ;;  %v235_v19 = vld [vmem:[%s8127_s3 + $0x1a0] sm:$0xff]  ;;  %v4785_v20 = vcombine.high %v223_v10, %v227_v11 }
  0x15   :  { %1082 = vmatpush1.bf16.msra.mxu1 %v4772_v33  ;;  %v245_v55 = vld [vmem:[%s8127_s3 + $0x1f0] sm:$0xff]  ;;  %v243_v27 = vld [vmem:[%s8127_s3 + $0x1e0] sm:$0xff]  ;;  %v4793_v28 = vcombine.high %v231_v18, %v235_v19  ;;  %v4792_v33 = vcombine.low %v231_v18, %v235_v19  ;;  %v184_v19 = vld [vmem:[%s8127_s3 + $0x8] sm:$0xff] }
  0x16   :  { %1083 = vmatprep.subr.bf16.mxu1 %v4781_v36  ;;  %v249_v62 = vld [vmem:[%s8127_s3 + $0x210] sm:$0xff]  ;;  %v4805_v0 = vcombine.high %v241_v54, %v245_v55  ;;  %v4804_v5 = vcombine.low %v241_v54, %v245_v55  ;;  %v247_v34 = vld [vmem:[%s8127_s3 + $0x200] sm:$0xff] }
  0x17   :  { %149 = vmatpush1.bf16.msra.mxu0 %v5469_v25  ;;  %v253_v63 = vld [vmem:[%s8127_s3 + $0x230] sm:$0xff]  ;;  %v4784_v25 = vcombine.low %v223_v10, %v227_v11  ;;  %v251_v35 = vld [vmem:[%s8127_s3 + $0x220] sm:$0xff] }
  0x18   :  { %150 = vmatprep.subr.bf16.mxu0 %v5470_v26  ;;  %v257_v6 = vld [vmem:[%s8127_s3 + $0x250] sm:$0xff]  ;;  %v4813_v8 = vcombine.high %v249_v62, %v253_v63  ;;  %v4812_v13 = vcombine.low %v249_v62, %v253_v63  ;;  %v239_v26 = vld [vmem:[%s8127_s3 + $0x1c0] sm:$0xff]  ;;  %v4809_v44 = vcombine.high %v247_v34, %v251_v35  ;;  %v4808_v47 = vcombine.low %v247_v34, %v251_v35 }
  0x19   :  { %1084 = vmatpush1.bf16.msra.mxu1 %v4780_v43  ;;  %v261_v7 = vld [vmem:[%s8127_s3 + $0x270] sm:$0xff]  ;;  %v4801_v36 = vcombine.high %v239_v26, %v243_v27  ;;  %v255_v42 = vld [vmem:[%s8127_s3 + $0x240] sm:$0xff] }
  0x1a   :  { %1085 = vmatprep.subr.bf16.mxu1 %v4789_v45  ;;  %v265_v14 = vld [vmem:[%s8127_s3 + $0x290] sm:$0xff]  ;;  %v4821_v16 = vcombine.high %v257_v6, %v261_v7  ;;  %v4820_v21 = vcombine.low %v257_v6, %v261_v7  ;;  %v259_v43 = vld [vmem:[%s8127_s3 + $0x260] sm:$0xff] }
  0x1b   :  { %151 = vmatpush1.bf16.msra.mxu0 %v5472_v31  ;;  %v269_v15 = vld [vmem:[%s8127_s3 + $0x2b0] sm:$0xff]  ;;  %v4817_v50 = vcombine.high %v255_v42, %v259_v43  ;;  %v275_v54 = vld [vmem:[%s8127_s3 + $0x2e0] sm:$0xff] }
  0x1c   :  { %152 = vmatprep.subr.bf16.mxu0 %v5473_v32  ;;  %v273_v22 = vld [vmem:[%s8127_s3 + $0x2d0] sm:$0xff]  ;;  %v4829_v24 = vcombine.high %v265_v14, %v269_v15  ;;  %v4828_v29 = vcombine.low %v265_v14, %v269_v15  ;;  %v283_v58 = vld [vmem:[%s8127_s3 + $0x320] sm:$0xff] }
  0x1d   :  { %1086 = vmatpush1.bf16.msra.mxu1 %v4788_v53  ;;  %v277_v23 = vld [vmem:[%s8127_s3 + $0x2f0] sm:$0xff]  ;;  %v271_v53 = vld [vmem:[%s8127_s3 + $0x2c0] sm:$0xff] }
  0x1e   :  { %1087 = vmatprep.subr.bf16.mxu1 %v4797_v56  ;;  %v281_v30 = vld [vmem:[%s8127_s3 + $0x310] sm:$0xff]  ;;  %v4837_v32 = vcombine.high %v273_v22, %v277_v23  ;;  %v4836_v37 = vcombine.low %v273_v22, %v277_v23  ;;  %v4833_v59 = vcombine.high %v271_v53, %v275_v54  ;;  %v291_v62 = vld [vmem:[%s8127_s3 + $0x360] sm:$0xff] }
  0x1f   :  { %153 = vmatpush1.bf16.msra.mxu0 %v5475_v39  ;;  %v285_v31 = vld [vmem:[%s8127_s3 + $0x330] sm:$0xff]  ;;  %v295_v3 = vld [vmem:[%s8127_s3 + $0x380] sm:$0xff] }
  0x20   :  { %993 = vmatprep.subr.bf16.mxu0 %v4745_v41  ;;  %v289_v38 = vld [vmem:[%s8127_s3 + $0x350] sm:$0xff]  ;;  %v4845_v40 = vcombine.high %v281_v30, %v285_v31  ;;  %v4800_v41 = vcombine.low %v239_v26, %v243_v27  ;;  %v4844_v45 = vcombine.low %v281_v30, %v285_v31  ;;  %v303_v11 = vld [vmem:[%s8127_s3 + $0x3c0] sm:$0xff] }
  0x21   :  { %1088 = vmatpush1.bf16.msra.mxu1 %v4796_v61  ;;  %v293_v39 = vld [vmem:[%s8127_s3 + $0x370] sm:$0xff]  ;;  %v287_v61 = vld [vmem:[%s8127_s3 + $0x340] sm:$0xff] }
  0x22   :  { %171 = vmatmul.mubr.bf16.vlgmr.msra.gmra.mrb[0].mxu0 %v29_v48  ;;  %1089 = vmatprep.subr.bf16.mxu1 %v4805_v0  ;;  %v4853_v46 = vcombine.high %v289_v38, %v293_v39  ;;  %v263_v48 = vld [vmem:[%s8127_s3 + $0x280] sm:$0xff]  ;;  %v4852_v51 = vcombine.low %v289_v38, %v293_v39  ;;  %v4848_v2 = vcombine.low %v287_v61, %v291_v62  ;;  %v297_v6 = vld [vmem:[%s8127_s3 + $0x390] sm:$0xff] }
  0x23   :  { %994 = vmatpush1.bf16.msra.mxu0 %v4744_v49  ;;  %v267_v49 = vld [vmem:[%s8127_s3 + $0x2a0] sm:$0xff]  ;;  %v301_v7 = vld [vmem:[%s8127_s3 + $0x3b0] sm:$0xff] }
  0x24   :  { %995 = vmatprep.subr.bf16.mxu0 %v4753_v52  ;;  %v4816_v52 = vcombine.low %v255_v42, %v259_v43  ;;  %v4825_v55 = vcombine.high %v263_v48, %v267_v49  ;;  %v4824_v56 = vcombine.low %v263_v48, %v267_v49  ;;  %v4860_v10 = vcombine.low %v297_v6, %v301_v7  ;;  %v305_v14 = vld [vmem:[%s8127_s3 + $0x3d0] sm:$0xff] }
  0x25   :  { %1090 = vmatpush1.bf16.msra.mxu1 %v4804_v5  ;;  %v309_v15 = vld [vmem:[%s8127_s3 + $0x3f0] sm:$0xff] }
  0x26   :  { %1091 = vmatprep.subr.bf16.mxu1 %v4813_v8  ;;  %v4868_v18 = vcombine.low %v305_v14, %v309_v15 }
  0x27   :  { %996 = vmatpush1.bf16.msra.mxu0 %v4752_v57  ;;  %v279_v57 = vld [vmem:[%s8127_s3 + $0x300] sm:$0xff] }
  0x28   :  { %997 = vmatprep.subr.bf16.mxu0 %v4761_v60  ;;  %v4832_v60 = vcombine.low %v271_v53, %v275_v54  ;;  %v4841_v63 = vcombine.high %v279_v57, %v283_v58  ;;  %v4840_v0 = vcombine.low %v279_v57, %v283_v58 }
  0x29   :  { %1092 = vmatpush1.bf16.msra.mxu1 %v4812_v13 }
  0x2a   :  { %1093 = vmatprep.subr.bf16.mxu1 %v4821_v16 }
  0x2b   :  { %998 = vmatpush1.bf16.msra.mxu0 %v4760_v1  ;;  %v4849_v1 = vcombine.high %v287_v61, %v291_v62 }
  0x2c   :  { %999 = vmatprep.subr.bf16.mxu0 %v4769_v4  ;;  %v299_v4 = vld [vmem:[%s8127_s3 + $0x3a0] sm:$0xff] }
  0x2d   :  { %1094 = vmatpush1.bf16.msra.mxu1 %v4820_v21  ;;  %v4857_v5 = vcombine.high %v295_v3, %v299_v4  ;;  %v4856_v8 = vcombine.low %v295_v3, %v299_v4 }
  0x2e   :  { %1095 = vmatprep.subr.bf16.mxu1 %v4829_v24 }
  0x2f   :  { %1000 = vmatpush1.bf16.msra.mxu0 %v4768_v9  ;;  %v4861_v9 = vcombine.high %v297_v6, %v301_v7 }
  0x30   :  { %1001 = vmatprep.subr.bf16.mxu0 %v4777_v12  ;;  %v307_v12 = vld [vmem:[%s8127_s3 + $0x3e0] sm:$0xff] }
  0x31   :  { %1096 = vmatpush1.bf16.msra.mxu1 %v4828_v29  ;;  %v4865_v13 = vcombine.high %v303_v11, %v307_v12  ;;  %v4864_v16 = vcombine.low %v303_v11, %v307_v12 }
  0x32   :  { %1097 = vmatprep.subr.bf16.mxu1 %v4837_v32 }
  0x33   :  { %1002 = vmatpush1.bf16.msra.mxu0 %v4776_v17  ;;  %v4869_v17 = vcombine.high %v305_v14, %v309_v15 }
  0x34   :  { %1003 = vmatprep.subr.bf16.mxu0 %v4785_v20  ;;  %v188_v20 = vld [vmem:[%s8127_s3 + $0x28] sm:$0xff] }
  0x35   :  { %1098 = vmatpush1.bf16.msra.mxu1 %v4836_v37  ;;  %v4747_v21 = vcombine.high %v184_v19, %v188_v20  ;;  %v4746_v22 = vcombine.low %v184_v19, %v188_v20 }
  0x36   :  { %1099 = vmatprep.subr.bf16.mxu1 %v4845_v40 }
  0x37   :  { %1004 = vmatpush1.bf16.msra.mxu0 %v4784_v25 }
  0x38   :  { %1005 = vmatprep.subr.bf16.mxu0 %v4793_v28 }
  0x39   :  { %1100 = vmatpush1.bf16.msra.mxu1 %v4844_v45 }
  0x3a   :  { %1101 = vmatprep.subr.bf16.mxu1 %v4853_v46 }
  0x3b   :  { %1006 = vmatpush1.bf16.msra.mxu0 %v4792_v33 }
  0x3c   :  { %1007 = vmatprep.subr.bf16.mxu0 %v4801_v36 }
  0x3d   :  { %1102 = vmatpush1.bf16.msra.mxu1 %v4852_v51 }
  0x3e   :  { %1103 = vmatprep.subr.bf16.mxu1 %v4861_v9 }
  0x3f   :  { %1008 = vmatpush1.bf16.msra.mxu0 %v4800_v41 }
  0x40   :  { %1009 = vmatprep.subr.bf16.mxu0 %v4809_v44 }
  0x41   :  { %1104 = vmatpush1.bf16.msra.mxu1 %v4860_v10 }
  0x42   :  { %1105 = vmatprep.subr.bf16.mxu1 %v4869_v17 }
  0x43   :  { %1010 = vmatpush1.bf16.msra.mxu0 %v4808_v47 }
  0x44   :  { %1011 = vmatprep.subr.bf16.mxu0 %v4817_v50 }
  0x45   :  { %1106 = vmatpush1.bf16.msra.mxu1 %v4868_v18 }
  0x47   :  { %1012 = vmatpush1.bf16.msra.mxu0 %v4816_v52 }
  0x48   :  { %1013 = vmatprep.subr.bf16.mxu0 %v4825_v55 }
  0x4b   :  { %1014 = vmatpush1.bf16.msra.mxu0 %v4824_v56 }
  0x4c   :  { %1015 = vmatprep.subr.bf16.mxu0 %v4833_v59 }
  0x4f   :  { %1016 = vmatpush1.bf16.msra.mxu0 %v4832_v60 }
  0x50   :  { %1017 = vmatprep.subr.bf16.mxu0 %v4841_v63 }
  0x53   :  { %1018 = vmatpush1.bf16.msra.mxu0 %v4840_v0 }
  0x54   :  { %1019 = vmatprep.subr.bf16.mxu0 %v4849_v1 }
  0x57   :  { %1020 = vmatpush1.bf16.msra.mxu0 %v4848_v2 }
  0x58   :  { %1021 = vmatprep.subr.bf16.mxu0 %v4857_v5 }
  0x5b   :  { %1022 = vmatpush1.bf16.msra.mxu0 %v4856_v8 }
  0x5c   :  { %1023 = vmatprep.subr.bf16.mxu0 %v4865_v13 }
  0x5f   :  { %1024 = vmatpush1.bf16.msra.mxu0 %v4864_v16 }
  0x60   :  { %1034 = vmatprep.subr.bf16.mxu0 %v4747_v21 }
  0x61   :  { %12 = vsyncpa [#allocation3], 0  ;;  %v48_v23 = vlaneseq  ;;  %v46_v26 = vld [vmem:[%s8126_s2] sm:$0x3]  ;;  %v192_v38 = vld [vmem:[%s8127_s3 + $0x48] sm:$0xff]  ;;  %vm4712_vm0 = vcmask 130048  }
  0x62   :  { %v196_v39 = vld [vmem:[%s8127_s3 + $0x68] sm:$0xff]  ;;  %v5476_v45 = vld [vmem:[%s8129_s5] ss:$28 sps:$4 sm:$0xff]   ;;  %v5482_v52 = vld [vmem:[%s8129_s5 + $0x38] ss:$28 sps:$4 sm:$0xff]  }
  0x63   :  { %v6445_v24 = vshrl.u32 %v48_v23, 7  ;;  %v4755_v42 = vcombine.high %v192_v38, %v196_v39  ;;  %v200_v43 = vld [vmem:[%s8127_s3 + $0x88] sm:$0xff]  ;;  %v5478_v46 = vld [vmem:[%s8129_s5 + $0x4] ss:$28 sps:$4 sm:$0xff]   ;;  %v4754_v47 = vcombine.low %v192_v38, %v196_v39  ;;  %v5484_v48 = vld [vmem:[%s8129_s5 + $0x3c] ss:$28 sps:$4 sm:$0xff]  }
  0x64   :  { %v204_v44 = vld [vmem:[%s8127_s3 + $0xa8] sm:$0xff]  ;;  %4026 = vmatprep.subr.bf16.mxu1 %v5478_v46  ;;  %v5490_v54 = vld [vmem:[%s8129_s5 + $0x74] ss:$28 sps:$4 sm:$0xff]   ;;  %v5502_v2 = vld [vmem:[%s8129_s5 + $0xe4] ss:$28 sps:$4 sm:$0xff]  }
  0x65   :  { %v6448_v25 = vsub.s32 0, %v6445_v24  ;;  %v6454_v27 = vsub.s32 1, %v6445_v24  ;;  %v4763_v49 = vcombine.high %v200_v43, %v204_v44  ;;  %v208_v50 = vld [vmem:[%s8127_s3 + $0xc8] sm:$0xff]  ;;  %v4762_v53 = vcombine.low %v200_v43, %v204_v44  ;;  %v5500_v6 = vld [vmem:[%s8129_s5 + $0xe0] ss:$28 sps:$4 sm:$0xff]  }
  0x66   :  { %v212_v51 = vld [vmem:[%s8127_s3 + $0xe8] sm:$0xff]  ;;  %v5508_v8 = vld [vmem:[%s8129_s5 + $0x11c] ss:$28 sps:$4 sm:$0xff]   ;;  %v5514_v14 = vld [vmem:[%s8129_s5 + $0x154] ss:$28 sps:$4 sm:$0xff]  }
  0x67   :  { %v51_v28 = vrot.slane %v46_v26, %v6448_v25  ;;  %v55_v29 = vrot.slane %v46_v26, %v6454_v27  ;;  %v4771_v55 = vcombine.high %v208_v50, %v212_v51  ;;  %v216_v56 = vld [vmem:[%s8127_s3 + $0x108] sm:$0xff]  ;;  %v4770_v59 = vcombine.low %v208_v50, %v212_v51  ;;  %v5506_v12 = vld [vmem:[%s8129_s5 + $0x118] ss:$28 sps:$4 sm:$0xff]  }
  0x68   :  { %v220_v57 = vld [vmem:[%s8127_s3 + $0x128] sm:$0xff]  ;;  %v5530_v39 = vld [vmem:[%s8129_s5 + $0x1f8] ss:$28 sps:$4 sm:$0xff]  }
  0x69   :  { %v5488_v58 = vld [vmem:[%s8129_s5 + $0x70] ss:$28 sps:$4 sm:$0xff]   ;;  %v4779_v61 = vcombine.high %v216_v56, %v220_v57  ;;  %v5494_v0 = vld [vmem:[%s8129_s5 + $0xa8] ss:$28 sps:$4 sm:$0xff]   ;;  %v4778_v1 = vcombine.low %v216_v56, %v220_v57 }
  0x6a   :  { %v5496_v60 = vld [vmem:[%s8129_s5 + $0xac] ss:$28 sps:$4 sm:$0xff]   ;;  %v5538_v43 = vld [vmem:[%s8129_s5 + $0x234] ss:$28 sps:$4 sm:$0xff]  }
  0x6b   :  { %v224_v62 = vld [vmem:[%s8127_s3 + $0x148] sm:$0xff] }
  0x6c   :  { %v228_v63 = vld [vmem:[%s8127_s3 + $0x168] sm:$0xff] }
  0x6d   :  { %v4787_v3 = vcombine.high %v224_v62, %v228_v63  ;;  %v232_v4 = vld [vmem:[%s8127_s3 + $0x188] sm:$0xff]  ;;  %v4786_v7 = vcombine.low %v224_v62, %v228_v63 }
  0x6e   :  { %v236_v5 = vld [vmem:[%s8127_s3 + $0x1a8] sm:$0xff] }
  0x6f   :  { %v4795_v9 = vcombine.high %v232_v4, %v236_v5  ;;  %v240_v10 = vld [vmem:[%s8127_s3 + $0x1c8] sm:$0xff]  ;;  %v4794_v13 = vcombine.low %v232_v4, %v236_v5  ;;  %v186_v4 = vld [vmem:[%s8127_s3 + $0x18] sm:$0xff] }
  0x70   :  { %v244_v11 = vld [vmem:[%s8127_s3 + $0x1e8] sm:$0xff]  ;;  %v190_v5 = vld [vmem:[%s8127_s3 + $0x38] sm:$0xff] }
  0x71   :  { %v4803_v15 = vcombine.high %v240_v10, %v244_v11  ;;  %v248_v16 = vld [vmem:[%s8127_s3 + $0x208] sm:$0xff]  ;;  %v4802_v19 = vcombine.low %v240_v10, %v244_v11  ;;  %v4750_v10 = vcombine.low %v186_v4, %v190_v5 }
  0x72   :  { %v252_v17 = vld [vmem:[%s8127_s3 + $0x228] sm:$0xff] }
  0x73   :  { %v5512_v18 = vld [vmem:[%s8129_s5 + $0x150] ss:$28 sps:$4 sm:$0xff]   ;;  %v4811_v21 = vcombine.high %v248_v16, %v252_v17  ;;  %v5518_v26 = vld [vmem:[%s8129_s5 + $0x188] ss:$28 sps:$4 sm:$0xff]  }
  0x74   :  { %v5520_v20 = vld [vmem:[%s8129_s5 + $0x18c] ss:$28 sps:$4 sm:$0xff]  }
  0x75   :  { %v260_v23 = vld [vmem:[%s8127_s3 + $0x268] sm:$0xff] }
  0x76   :  { %v276_v38 = vld [vmem:[%s8127_s3 + $0x2e8] sm:$0xff] }
  0x77   :  { %v284_v46 = vld [vmem:[%s8127_s3 + $0x328] sm:$0xff] }
  0x78   :  { %v288_v51 = vld [vmem:[%s8127_s3 + $0x348] sm:$0xff] }
  0x79   :  { %v296_v57 = vld [vmem:[%s8127_s3 + $0x388] sm:$0xff] }
  0x7a   :  { %v304_v63 = vld [vmem:[%s8127_s3 + $0x3c8] sm:$0xff] }
  0xf5   :  { %v172_v30 = vpop.f32.mrb[0].mxu0 }
  0xf6   :  { %v173_v31 = vadd.f32 %v172_v30, %v51_v28  ;;  %v174_v32 = vpop.f32.mrb[1].mxu0  ;;  %v4810_v28 = vcombine.low %v248_v16, %v252_v17  ;;  %v210_v16 = vld [vmem:[%s8127_s3 + $0xd8] sm:$0xff] }
  0xf7   :  { %v175_v33 = vadd.f32 %v174_v32, %v55_v29  ;;  %v176_v34 = vpop.f32.mrb[2].mxu0  ;;  %v5526_v29 = vld [vmem:[%s8129_s5 + $0x1c4] ss:$28 sps:$4 sm:$0xff]   ;;  %v268_v32 = vld [vmem:[%s8127_s3 + $0x2a8] sm:$0xff]  ;;  %v214_v17 = vld [vmem:[%s8127_s3 + $0xf8] sm:$0xff] }
  0xf8   :  { %v179_v35 = vmax.f32 %v173_v31, 0.0  ;;  %v177_v36 = vpop.f32.mrb[3].mxu0  ;;  %v264_v31 = vld [vmem:[%s8127_s3 + $0x288] sm:$0xff] }
  0xf9   :  { %v180_v37 = vmax.f32 %v175_v33, 0.0  ;;  %v5524_v33 = vld [vmem:[%s8129_s5 + $0x1c0] ss:$28 sps:$4 sm:$0xff]   ;;  %v4827_v36 = vcombine.high %v264_v31, %v268_v32 }
  0xfa   :  { %v6466_v41 = vpack.c.bf16 %v179_v35, %v179_v35  ;;  %v5532_v35 = vld [vmem:[%s8129_s5 + $0x1fc] ss:$28 sps:$4 sm:$0xff]  }
  0xfb   :  { %v6464_v40 = vpack.c.bf16 %v180_v37, %v180_v37  ;;  %v272_v37 = vld [vmem:[%s8127_s3 + $0x2c8] sm:$0xff] }
  0xfc   :  { %v4835_v44 = vcombine.high %v272_v37, %v276_v38 }
  0xfd   :  { %1025 = vmatprep.mubr.bf16.mxu0 %v6464_v40  ;;  %1107 = vmatprep.mubr.bf16.mxu1 %v6464_v40 }
  0xfe   :  { %1026 = vmatmul.mubr.bf16.vlgmr.msra.gmra.mrb[4].mxu0 %v6466_v41  ;;  %1108 = vmatmul.mubr.bf16.vlgmr.msra.gmra.mrb[0].mxu1 %v6466_v41 }
  0xff   :  { %1035 = vmatpush1.bf16.msra.mxu0 %v4746_v22  ;;  %1066 = vmatprep.mubr.bf16.mxu0 %v6464_v40  ;;  %v256_v22 = vld [vmem:[%s8127_s3 + $0x248] sm:$0xff] }
 0x100   :  { %1036 = vmatprep.subr.bf16.mxu0 %v4755_v42  ;;  %4027 = vmatpush1.bf16.msra.mxu1 %v5476_v45  ;;  %v4819_v30 = vcombine.high %v256_v22, %v260_v23  ;;  %v4818_v34 = vcombine.low %v256_v22, %v260_v23  ;;  %v4826_v42 = vcombine.low %v264_v31, %v268_v32  ;;  %v280_v45 = vld [vmem:[%s8127_s3 + $0x308] sm:$0xff]  ;;  %v226_v23 = vld [vmem:[%s8127_s3 + $0x158] sm:$0xff] }
 0x101   :  { %4028 = vmatprep.subr.bf16.mxu1 %v5484_v48  ;;  %v4834_v48 = vcombine.low %v272_v37, %v276_v38  ;;  %v4843_v50 = vcombine.high %v280_v45, %v284_v46  ;;  %v238_v31 = vld [vmem:[%s8127_s3 + $0x1b8] sm:$0xff]  ;;  %v5560_v37 = vld [vmem:[%s8129_s5 + $0x310] ss:$28 sps:$4 sm:$0xff]  }
 0x103   :  { %1037 = vmatpush1.bf16.msra.mxu0 %v4754_v47  ;;  %v5536_v47 = vld [vmem:[%s8129_s5 + $0x230] ss:$28 sps:$4 sm:$0xff]  }
 0x104   :  { %1038 = vmatprep.subr.bf16.mxu0 %v4763_v49  ;;  %4029 = vmatpush1.bf16.msra.mxu1 %v5482_v52  ;;  %v5544_v49 = vld [vmem:[%s8129_s5 + $0x26c] ss:$28 sps:$4 sm:$0xff]  }
 0x105   :  { %4030 = vmatprep.subr.bf16.mxu1 %v5490_v54  ;;  %v292_v52 = vld [vmem:[%s8127_s3 + $0x368] sm:$0xff]  ;;  %v4842_v54 = vcombine.low %v280_v45, %v284_v46 }
 0x106   :  { %v4851_v56 = vcombine.high %v288_v51, %v292_v52  ;;  %v5566_v45 = vld [vmem:[%s8129_s5 + $0x348] ss:$28 sps:$4 sm:$0xff]  }
 0x107   :  { %1039 = vmatpush1.bf16.msra.mxu0 %v4762_v53  ;;  %v5542_v53 = vld [vmem:[%s8129_s5 + $0x268] ss:$28 sps:$4 sm:$0xff]  }
 0x108   :  { %1040 = vmatprep.subr.bf16.mxu0 %v4771_v55  ;;  %4031 = vmatpush1.bf16.msra.mxu1 %v5488_v58  ;;  %v5550_v55 = vld [vmem:[%s8129_s5 + $0x2a4] ss:$28 sps:$4 sm:$0xff]   ;;  %v300_v58 = vld [vmem:[%s8127_s3 + $0x3a8] sm:$0xff] }
 0x109   :  { %4032 = vmatprep.subr.bf16.mxu1 %v5496_v60  ;;  %v4850_v60 = vcombine.low %v288_v51, %v292_v52  ;;  %v4859_v62 = vcombine.high %v296_v57, %v300_v58 }
 0x10b   :  { %1041 = vmatpush1.bf16.msra.mxu0 %v4770_v59  ;;  %v5548_v59 = vld [vmem:[%s8129_s5 + $0x2a0] ss:$28 sps:$4 sm:$0xff]  }
 0x10c   :  { %1042 = vmatprep.subr.bf16.mxu0 %v4779_v61  ;;  %4033 = vmatpush1.bf16.msra.mxu1 %v5494_v0  ;;  %v5556_v61 = vld [vmem:[%s8129_s5 + $0x2dc] ss:$28 sps:$4 sm:$0xff]   ;;  %v308_v0 = vld [vmem:[%s8127_s3 + $0x3e8] sm:$0xff] }
 0x10d   :  { %4034 = vmatprep.subr.bf16.mxu1 %v5502_v2  ;;  %v4858_v2 = vcombine.low %v296_v57, %v300_v58  ;;  %v274_v57 = vld [vmem:[%s8127_s3 + $0x2d8] sm:$0xff] }
 0x10e   :  { %v278_v58 = vld [vmem:[%s8127_s3 + $0x2f8] sm:$0xff] }
 0x10f   :  { %1043 = vmatpush1.bf16.msra.mxu0 %v4778_v1  ;;  %v5554_v1 = vld [vmem:[%s8129_s5 + $0x2d8] ss:$28 sps:$4 sm:$0xff]  }
 0x110   :  { %1044 = vmatprep.subr.bf16.mxu0 %v4787_v3  ;;  %4035 = vmatpush1.bf16.msra.mxu1 %v5500_v6  ;;  %v4867_v3 = vcombine.high %v304_v63, %v308_v0  ;;  %v4866_v6 = vcombine.low %v304_v63, %v308_v0  ;;  %v4838_v63 = vcombine.low %v274_v57, %v278_v58 }
 0x111   :  { %4036 = vmatprep.subr.bf16.mxu1 %v5508_v8  ;;  %v194_v8 = vld [vmem:[%s8127_s3 + $0x58] sm:$0xff] }
 0x113   :  { %1045 = vmatpush1.bf16.msra.mxu0 %v4786_v7  ;;  %v4751_v7 = vcombine.high %v186_v4, %v190_v5  ;;  %v298_v5 = vld [vmem:[%s8127_s3 + $0x398] sm:$0xff] }
 0x114   :  { %1046 = vmatprep.subr.bf16.mxu0 %v4795_v9  ;;  %4037 = vmatpush1.bf16.msra.mxu1 %v5506_v12  ;;  %v198_v9 = vld [vmem:[%s8127_s3 + $0x78] sm:$0xff] }
 0x115   :  { %4038 = vmatprep.subr.bf16.mxu1 %v5514_v14  ;;  %v4759_v11 = vcombine.high %v194_v8, %v198_v9  ;;  %v202_v12 = vld [vmem:[%s8127_s3 + $0x98] sm:$0xff]  ;;  %v4758_v14 = vcombine.low %v194_v8, %v198_v9 }
 0x116   :  { %v306_v9 = vld [vmem:[%s8127_s3 + $0x3d8] sm:$0xff] }
 0x117   :  { %1047 = vmatpush1.bf16.msra.mxu0 %v4794_v13  ;;  %v206_v13 = vld [vmem:[%s8127_s3 + $0xb8] sm:$0xff] }
 0x118   :  { %1048 = vmatprep.subr.bf16.mxu0 %v4803_v15  ;;  %4039 = vmatpush1.bf16.msra.mxu1 %v5512_v18  ;;  %v4767_v15 = vcombine.high %v202_v12, %v206_v13  ;;  %v4766_v18 = vcombine.low %v202_v12, %v206_v13 }
 0x119   :  { %4040 = vmatprep.subr.bf16.mxu1 %v5520_v20  ;;  %v218_v20 = vld [vmem:[%s8127_s3 + $0x118] sm:$0xff] }
 0x11b   :  { %1049 = vmatpush1.bf16.msra.mxu0 %v4802_v19  ;;  %v4775_v19 = vcombine.high %v210_v16, %v214_v17 }
 0x11c   :  { %1050 = vmatprep.subr.bf16.mxu0 %v4811_v21  ;;  %4041 = vmatpush1.bf16.msra.mxu1 %v5518_v26  ;;  %v4774_v21 = vcombine.low %v210_v16, %v214_v17  ;;  %v230_v26 = vld [vmem:[%s8127_s3 + $0x178] sm:$0xff]  ;;  %v5487_v16 = vld [vmem:[%s8129_s5 + $0x44] ss:$28 sps:$4 sm:$0xff]  }
 0x11d   :  { %4042 = vmatprep.subr.bf16.mxu1 %v5526_v29  ;;  %v4791_v29 = vcombine.high %v226_v23, %v230_v26  ;;  %v4790_v32 = vcombine.low %v226_v23, %v230_v26  ;;  %v5485_v17 = vld [vmem:[%s8129_s5 + $0x40] ss:$28 sps:$4 sm:$0xff]  }
 0x11e   :  { %v5509_v23 = vld [vmem:[%s8129_s5 + $0x120] ss:$28 sps:$4 sm:$0xff]  }
 0x11f   :  { %1051 = vmatpush1.bf16.msra.mxu0 %v4810_v28  ;;  %v5517_v26 = vld [vmem:[%s8129_s5 + $0x15c] ss:$28 sps:$4 sm:$0xff]  }
 0x120   :  { %1052 = vmatprep.subr.bf16.mxu0 %v4819_v30  ;;  %4043 = vmatpush1.bf16.msra.mxu1 %v5524_v33  ;;  %v234_v30 = vld [vmem:[%s8127_s3 + $0x198] sm:$0xff] }
 0x121   :  { %4044 = vmatprep.subr.bf16.mxu1 %v5532_v35  ;;  %v4799_v33 = vcombine.high %v234_v30, %v238_v31  ;;  %v242_v35 = vld [vmem:[%s8127_s3 + $0x1d8] sm:$0xff]  ;;  %v4798_v38 = vcombine.low %v234_v30, %v238_v31  ;;  %v5521_v30 = vld [vmem:[%s8129_s5 + $0x190] ss:$28 sps:$4 sm:$0xff]  }
 0x122   :  { %v5529_v31 = vld [vmem:[%s8129_s5 + $0x1cc] ss:$28 sps:$4 sm:$0xff]  }
 0x123   :  { %1053 = vmatpush1.bf16.msra.mxu0 %v4818_v34  ;;  %v5562_v34 = vld [vmem:[%s8129_s5 + $0x314] ss:$28 sps:$4 sm:$0xff]  }
 0x124   :  { %1054 = vmatprep.subr.bf16.mxu0 %v4827_v36  ;;  %4045 = vmatpush1.bf16.msra.mxu1 %v5530_v39  ;;  %v246_v36 = vld [vmem:[%s8127_s3 + $0x1f8] sm:$0xff] }
 0x125   :  { %4046 = vmatprep.subr.bf16.mxu1 %v5538_v43  ;;  %v4807_v39 = vcombine.high %v242_v35, %v246_v36  ;;  %v250_v43 = vld [vmem:[%s8127_s3 + $0x218] sm:$0xff]  ;;  %v4806_v46 = vcombine.low %v242_v35, %v246_v36 }
 0x126   :  { %v5541_v35 = vld [vmem:[%s8129_s5 + $0x23c] ss:$28 sps:$4 sm:$0xff]  }
 0x127   :  { %1055 = vmatpush1.bf16.msra.mxu0 %v4826_v42  ;;  %v5568_v42 = vld [vmem:[%s8129_s5 + $0x34c] ss:$28 sps:$4 sm:$0xff]   ;;  %v5539_v36 = vld [vmem:[%s8129_s5 + $0x238] ss:$28 sps:$4 sm:$0xff]  }
 0x128   :  { %1056 = vmatprep.subr.bf16.mxu0 %v4835_v44  ;;  %4047 = vmatpush1.bf16.msra.mxu1 %v5536_v47  ;;  %v254_v44 = vld [vmem:[%s8127_s3 + $0x238] sm:$0xff] }
 0x129   :  { %4048 = vmatprep.subr.bf16.mxu1 %v5544_v49  ;;  %v4815_v47 = vcombine.high %v250_v43, %v254_v44  ;;  %v258_v49 = vld [vmem:[%s8127_s3 + $0x258] sm:$0xff]  ;;  %v4814_v51 = vcombine.low %v250_v43, %v254_v44  ;;  %v5559_v43 = vld [vmem:[%s8129_s5 + $0x2e4] ss:$28 sps:$4 sm:$0xff]  }
 0x12a   :  { %v5557_v44 = vld [vmem:[%s8129_s5 + $0x2e0] ss:$28 sps:$4 sm:$0xff]  }
 0x12b   :  { %1057 = vmatpush1.bf16.msra.mxu0 %v4834_v48  ;;  %v5574_v48 = vld [vmem:[%s8129_s5 + $0x384] ss:$28 sps:$4 sm:$0xff]  }
 0x12c   :  { %1058 = vmatprep.subr.bf16.mxu0 %v4843_v50  ;;  %4049 = vmatpush1.bf16.msra.mxu1 %v5542_v53  ;;  %v262_v50 = vld [vmem:[%s8127_s3 + $0x278] sm:$0xff] }
 0x12d   :  { %4050 = vmatprep.subr.bf16.mxu1 %v5550_v55  ;;  %v4823_v52 = vcombine.high %v258_v49, %v262_v50  ;;  %v266_v53 = vld [vmem:[%s8127_s3 + $0x298] sm:$0xff]  ;;  %v4822_v55 = vcombine.low %v258_v49, %v262_v50  ;;  %v5577_v49 = vld [vmem:[%s8129_s5 + $0x38c] ss:$28 sps:$4 sm:$0xff]   ;;  %v6857_v50 = vld [vmem:[%s8128_s4] sm:$0xff] }
 0x12f   :  { %1059 = vmatpush1.bf16.msra.mxu0 %v4842_v54  ;;  %v270_v54 = vld [vmem:[%s8127_s3 + $0x2b8] sm:$0xff] }
 0x130   :  { %1060 = vmatprep.subr.bf16.mxu0 %v4851_v56  ;;  %4051 = vmatpush1.bf16.msra.mxu1 %v5548_v59  ;;  %v4831_v56 = vcombine.high %v266_v53, %v270_v54  ;;  %v4830_v59 = vcombine.low %v266_v53, %v270_v54 }
 0x131   :  { %4052 = vmatprep.subr.bf16.mxu1 %v5556_v61  ;;  %v282_v61 = vld [vmem:[%s8127_s3 + $0x318] sm:$0xff] }
 0x133   :  { %1061 = vmatpush1.bf16.msra.mxu0 %v4850_v60  ;;  %v4839_v60 = vcombine.high %v274_v57, %v278_v58 }
 0x134   :  { %1062 = vmatprep.subr.bf16.mxu0 %v4859_v62  ;;  %4053 = vmatpush1.bf16.msra.mxu1 %v5554_v1  ;;  %v286_v62 = vld [vmem:[%s8127_s3 + $0x338] sm:$0xff] }
 0x135   :  { %4054 = vmatprep.subr.bf16.mxu1 %v5562_v34  ;;  %v4847_v0 = vcombine.high %v282_v61, %v286_v62  ;;  %v290_v1 = vld [vmem:[%s8127_s3 + $0x358] sm:$0xff] }
 0x136   :  { %v5533_v34 = vld [vmem:[%s8129_s5 + $0x200] ss:$28 sps:$4 sm:$0xff]  }
 0x137   :  { %1063 = vmatpush1.bf16.msra.mxu0 %v4858_v2  ;;  %v294_v2 = vld [vmem:[%s8127_s3 + $0x378] sm:$0xff] }
 0x138   :  { %1064 = vmatprep.subr.bf16.mxu0 %v4867_v3  ;;  %4055 = vmatpush1.bf16.msra.mxu1 %v5560_v37  ;;  %v4846_v3 = vcombine.low %v282_v61, %v286_v62  ;;  %v4855_v4 = vcombine.high %v290_v1, %v294_v2  ;;  %v5547_v37 = vld [vmem:[%s8129_s5 + $0x274] ss:$28 sps:$4 sm:$0xff]  }
 0x139   :  { %4056 = vmatprep.subr.bf16.mxu1 %v5568_v42  ;;  %v5551_v42 = vld [vmem:[%s8129_s5 + $0x2a8] ss:$28 sps:$4 sm:$0xff]  }
 0x13b   :  { %1065 = vmatpush1.bf16.msra.mxu0 %v4866_v6  ;;  %v302_v6 = vld [vmem:[%s8127_s3 + $0x3b8] sm:$0xff] }
 0x13c   :  { %1116 = vmatprep.subr.bf16.mxu0 %v4751_v7  ;;  %4057 = vmatpush1.bf16.msra.mxu1 %v5566_v45  ;;  %v4854_v7 = vcombine.low %v290_v1, %v294_v2  ;;  %v4863_v8 = vcombine.high %v298_v5, %v302_v6  ;;  %v5565_v45 = vld [vmem:[%s8129_s5 + $0x31c] ss:$28 sps:$4 sm:$0xff]  }
 0x13d   :  { %4067 = vmatprep.subr.bf16.mxu1 %v5574_v48  ;;  %v5569_v48 = vld [vmem:[%s8129_s5 + $0x350] ss:$28 sps:$4 sm:$0xff]   ;;  %v5572_v2 = vld [vmem:[%s8129_s5 + $0x380] ss:$28 sps:$4 sm:$0xff]  }
 0x13e   :  { %1067 = vmatmul.mubr.bf16.vlgmr.msra.gmra.mrb[8].mxu0 %v6466_v41 }
 0x13f   :  { %1117 = vmatpush1.bf16.msra.mxu0 %v4750_v10  ;;  %1148 = vmatprep.mubr.bf16.mxu0 %v6464_v40  ;;  %v222_v40 = vld [vmem:[%s8127_s3 + $0x138] sm:$0xff] }
 0x140   :  { %1118 = vmatprep.subr.bf16.mxu0 %v4759_v11  ;;  %v4783_v22 = vcombine.high %v218_v20, %v222_v40  ;;  %v4782_v28 = vcombine.low %v218_v20, %v222_v40  ;;  %v310_v10 = vld [vmem:[%s8127_s3 + $0x3f8] sm:$0xff]  ;;  %v4862_v11 = vcombine.low %v298_v5, %v302_v6  ;;  %v5497_v20 = vld [vmem:[%s8129_s5 + $0xb0] ss:$28 sps:$4 sm:$0xff]   ;;  %v5583_v6 = vld [vmem:[%s8129_s5 + $0x3c4] ss:$28 sps:$4 sm:$0xff]  }
 0x141   :  { %v4871_v12 = vcombine.high %v306_v9, %v310_v10  ;;  %v4870_v13 = vcombine.low %v306_v9, %v310_v10  ;;  %v5505_v40 = vld [vmem:[%s8129_s5 + $0xec] ss:$28 sps:$4 sm:$0xff]   ;;  %v5580_v5 = vld [vmem:[%s8129_s5 + $0x3bc] ss:$28 sps:$4 sm:$0xff]   ;;  %v5586_v9 = vld [vmem:[%s8129_s5 + $0x3f4] ss:$28 sps:$4 sm:$0xff]  }
 0x142   :  { %v5589_v10 = vld [vmem:[%s8129_s5 + $0x3fc] ss:$28 sps:$4 sm:$0xff]  }
 0x143   :  { %1119 = vmatpush1.bf16.msra.mxu0 %v4758_v14  ;;  %v5481_v14 = vld [vmem:[%s8129_s5 + $0xc] ss:$28 sps:$4 sm:$0xff]  }
 0x144   :  { %1120 = vmatprep.subr.bf16.mxu0 %v4767_v15  ;;  %v5479_v15 = vld [vmem:[%s8129_s5 + $0x8] ss:$28 sps:$4 sm:$0xff]  }
 0x147   :  { %1121 = vmatpush1.bf16.msra.mxu0 %v4766_v18  ;;  %v5493_v18 = vld [vmem:[%s8129_s5 + $0x7c] ss:$28 sps:$4 sm:$0xff]  }
 0x148   :  { %1122 = vmatprep.subr.bf16.mxu0 %v4775_v19  ;;  %v5491_v19 = vld [vmem:[%s8129_s5 + $0x78] ss:$28 sps:$4 sm:$0xff]  }
 0x14b   :  { %1123 = vmatpush1.bf16.msra.mxu0 %v4774_v21  ;;  %v5503_v21 = vld [vmem:[%s8129_s5 + $0xe8] ss:$28 sps:$4 sm:$0xff]  }
 0x14c   :  { %1124 = vmatprep.subr.bf16.mxu0 %v4783_v22  ;;  %v5511_v22 = vld [vmem:[%s8129_s5 + $0x124] ss:$28 sps:$4 sm:$0xff]  }
 0x14f   :  { %1125 = vmatpush1.bf16.msra.mxu0 %v4782_v28  ;;  %v5515_v28 = vld [vmem:[%s8129_s5 + $0x158] ss:$28 sps:$4 sm:$0xff]  }
 0x150   :  { %1126 = vmatprep.subr.bf16.mxu0 %v4791_v29  ;;  %v5523_v29 = vld [vmem:[%s8129_s5 + $0x194] ss:$28 sps:$4 sm:$0xff]  }
 0x153   :  { %1127 = vmatpush1.bf16.msra.mxu0 %v4790_v32  ;;  %v5527_v32 = vld [vmem:[%s8129_s5 + $0x1c8] ss:$28 sps:$4 sm:$0xff]  }
 0x154   :  { %1128 = vmatprep.subr.bf16.mxu0 %v4799_v33  ;;  %v5535_v33 = vld [vmem:[%s8129_s5 + $0x204] ss:$28 sps:$4 sm:$0xff]  }
 0x157   :  { %1129 = vmatpush1.bf16.msra.mxu0 %v4798_v38  ;;  %v5545_v38 = vld [vmem:[%s8129_s5 + $0x270] ss:$28 sps:$4 sm:$0xff]  }
 0x158   :  { %1130 = vmatprep.subr.bf16.mxu0 %v4807_v39  ;;  %v5553_v39 = vld [vmem:[%s8129_s5 + $0x2ac] ss:$28 sps:$4 sm:$0xff]  }
 0x15b   :  { %1131 = vmatpush1.bf16.msra.mxu0 %v4806_v46  ;;  %v5563_v46 = vld [vmem:[%s8129_s5 + $0x318] ss:$28 sps:$4 sm:$0xff]  }
 0x15c   :  { %1132 = vmatprep.subr.bf16.mxu0 %v4815_v47  ;;  %v5571_v47 = vld [vmem:[%s8129_s5 + $0x354] ss:$28 sps:$4 sm:$0xff]  }
 0x15f   :  { %1133 = vmatpush1.bf16.msra.mxu0 %v4814_v51  ;;  %v316_v51 = vrot.slane %v6857_v50, %v6448_v25 }
 0x160   :  { %1134 = vmatprep.subr.bf16.mxu0 %v4823_v52  ;;  %v320_v52 = vrot.slane %v6857_v50, %v6454_v27 }
 0x163   :  { %1135 = vmatpush1.bf16.msra.mxu0 %v4822_v55 }
 0x164   :  { %1136 = vmatprep.subr.bf16.mxu0 %v4831_v56 }
 0x167   :  { %1137 = vmatpush1.bf16.msra.mxu0 %v4830_v59 }
 0x168   :  { %1138 = vmatprep.subr.bf16.mxu0 %v4839_v60 }
 0x16b   :  { %1139 = vmatpush1.bf16.msra.mxu0 %v4838_v63 }
 0x16c   :  { %1140 = vmatprep.subr.bf16.mxu0 %v4847_v0 }
 0x16f   :  { %1141 = vmatpush1.bf16.msra.mxu0 %v4846_v3  ;;  %v5575_v3 = vld [vmem:[%s8129_s5 + $0x388] ss:$28 sps:$4 sm:$0xff]  }
 0x170   :  { %1142 = vmatprep.subr.bf16.mxu0 %v4855_v4 }
 0x173   :  { %1143 = vmatpush1.bf16.msra.mxu0 %v4854_v7  ;;  %v5578_v7 = vld [vmem:[%s8129_s5 + $0x3b8] ss:$28 sps:$4 sm:$0xff]  }
 0x174   :  { %1144 = vmatprep.subr.bf16.mxu0 %v4863_v8  ;;  %v5581_v8 = vld [vmem:[%s8129_s5 + $0x3c0] ss:$28 sps:$4 sm:$0xff]  }
 0x177   :  { %1145 = vmatpush1.bf16.msra.mxu0 %v4862_v11  ;;  %v5584_v11 = vld [vmem:[%s8129_s5 + $0x3f0] ss:$28 sps:$4 sm:$0xff]  }
 0x178   :  { %1146 = vmatprep.subr.bf16.mxu0 %v4871_v12  ;;  %v5587_v12 = vld [vmem:[%s8129_s5 + $0x3f8] ss:$28 sps:$4 sm:$0xff]  }
 0x17b   :  { %1147 = vmatpush1.bf16.msra.mxu0 %v4870_v13  ;;  %v5592_v13 = vld [vmem:[%s8129_s5 + $0x42c] ss:$28 sps:$4 sm:$0xff]  }
 0x17c   :  { %4190 = vmatprep.subr.bf16.mxu0 %v5481_v14  ;;  %v5595_v14 = vld [vmem:[%s8129_s5 + $0x434] ss:$28 sps:$4 sm:$0xff]  }
 0x17e   :  { %1149 = vmatmul.mubr.bf16.vlgmr.msra.gmra.mrb[12].mxu0 %v6466_v41  ;;  %v5499_v41 = vld [vmem:[%s8129_s5 + $0xb4] ss:$28 sps:$4 sm:$0xff]  }
 0x17f   :  { %4191 = vmatpush1.bf16.msra.mxu0 %v5479_v15  ;;  %v5590_v15 = vld [vmem:[%s8129_s5 + $0x428] ss:$28 sps:$4 sm:$0xff]  }
 0x180   :  { %4192 = vmatprep.subr.bf16.mxu0 %v5487_v16  ;;  %v5593_v16 = vld [vmem:[%s8129_s5 + $0x430] ss:$28 sps:$4 sm:$0xff]  }
 0x183   :  { %4193 = vmatpush1.bf16.msra.mxu0 %v5485_v17  ;;  %v5598_v17 = vld [vmem:[%s8129_s5 + $0x464] ss:$28 sps:$4 sm:$0xff]  }
 0x184   :  { %4194 = vmatprep.subr.bf16.mxu0 %v5493_v18  ;;  %v5601_v18 = vld [vmem:[%s8129_s5 + $0x46c] ss:$28 sps:$4 sm:$0xff]  }
 0x187   :  { %4195 = vmatpush1.bf16.msra.mxu0 %v5491_v19  ;;  %v5596_v19 = vld [vmem:[%s8129_s5 + $0x460] ss:$28 sps:$4 sm:$0xff]  }
 0x188   :  { %4196 = vmatprep.subr.bf16.mxu0 %v5499_v41  ;;  %v5599_v41 = vld [vmem:[%s8129_s5 + $0x468] ss:$28 sps:$4 sm:$0xff]  }
 0x18b   :  { %4197 = vmatpush1.bf16.msra.mxu0 %v5497_v20  ;;  %v5604_v20 = vld [vmem:[%s8129_s5 + $0x49c] ss:$28 sps:$4 sm:$0xff]  }
 0x18c   :  { %4198 = vmatprep.subr.bf16.mxu0 %v5505_v40  ;;  %v5607_v40 = vld [vmem:[%s8129_s5 + $0x4a4] ss:$28 sps:$4 sm:$0xff]  }
 0x18f   :  { %4199 = vmatpush1.bf16.msra.mxu0 %v5503_v21  ;;  %v5602_v21 = vld [vmem:[%s8129_s5 + $0x498] ss:$28 sps:$4 sm:$0xff]  }
 0x190   :  { %4200 = vmatprep.subr.bf16.mxu0 %v5511_v22  ;;  %v5605_v22 = vld [vmem:[%s8129_s5 + $0x4a0] ss:$28 sps:$4 sm:$0xff]  }
 0x193   :  { %4201 = vmatpush1.bf16.msra.mxu0 %v5509_v23  ;;  %v5610_v23 = vld [vmem:[%s8129_s5 + $0x4d4] ss:$28 sps:$4 sm:$0xff]  }
 0x194   :  { %4202 = vmatprep.subr.bf16.mxu0 %v5517_v26  ;;  %v5613_v26 = vld [vmem:[%s8129_s5 + $0x4dc] ss:$28 sps:$4 sm:$0xff]  }
 0x197   :  { %4203 = vmatpush1.bf16.msra.mxu0 %v5515_v28  ;;  %v5608_v28 = vld [vmem:[%s8129_s5 + $0x4d0] ss:$28 sps:$4 sm:$0xff]  }
 0x198   :  { %4204 = vmatprep.subr.bf16.mxu0 %v5523_v29  ;;  %v5611_v29 = vld [vmem:[%s8129_s5 + $0x4d8] ss:$28 sps:$4 sm:$0xff]  }
 0x19b   :  { %4205 = vmatpush1.bf16.msra.mxu0 %v5521_v30  ;;  %v5616_v30 = vld [vmem:[%s8129_s5 + $0x50c] ss:$28 sps:$4 sm:$0xff]  }
 0x19c   :  { %4206 = vmatprep.subr.bf16.mxu0 %v5529_v31  ;;  %v5619_v31 = vld [vmem:[%s8129_s5 + $0x514] ss:$28 sps:$4 sm:$0xff]  }
 0x19f   :  { %4207 = vmatpush1.bf16.msra.mxu0 %v5527_v32  ;;  %v5614_v32 = vld [vmem:[%s8129_s5 + $0x508] ss:$28 sps:$4 sm:$0xff]  }
 0x1a0   :  { %4208 = vmatprep.subr.bf16.mxu0 %v5535_v33  ;;  %v5617_v33 = vld [vmem:[%s8129_s5 + $0x510] ss:$28 sps:$4 sm:$0xff]  }
 0x1a3   :  { %4209 = vmatpush1.bf16.msra.mxu0 %v5533_v34  ;;  %v5622_v34 = vld [vmem:[%s8129_s5 + $0x544] ss:$28 sps:$4 sm:$0xff]  }
 0x1a4   :  { %4210 = vmatprep.subr.bf16.mxu0 %v5541_v35  ;;  %v5625_v35 = vld [vmem:[%s8129_s5 + $0x54c] ss:$28 sps:$4 sm:$0xff]  }
 0x1a7   :  { %4211 = vmatpush1.bf16.msra.mxu0 %v5539_v36  ;;  %v5620_v36 = vld [vmem:[%s8129_s5 + $0x540] ss:$28 sps:$4 sm:$0xff]  }
 0x1a8   :  { %4212 = vmatprep.subr.bf16.mxu0 %v5547_v37  ;;  %v5623_v37 = vld [vmem:[%s8129_s5 + $0x548] ss:$28 sps:$4 sm:$0xff]  }
 0x1ab   :  { %4213 = vmatpush1.bf16.msra.mxu0 %v5545_v38  ;;  %v5628_v38 = vld [vmem:[%s8129_s5 + $0x57c] ss:$28 sps:$4 sm:$0xff]  }
 0x1ac   :  { %4214 = vmatprep.subr.bf16.mxu0 %v5553_v39  ;;  %v5631_v39 = vld [vmem:[%s8129_s5 + $0x584] ss:$28 sps:$4 sm:$0xff]  }
 0x1af   :  { %4215 = vmatpush1.bf16.msra.mxu0 %v5551_v42  ;;  %v5626_v42 = vld [vmem:[%s8129_s5 + $0x578] ss:$28 sps:$4 sm:$0xff]  }
 0x1b0   :  { %4216 = vmatprep.subr.bf16.mxu0 %v5559_v43  ;;  %v5629_v43 = vld [vmem:[%s8129_s5 + $0x580] ss:$28 sps:$4 sm:$0xff]  }
 0x1b3   :  { %4217 = vmatpush1.bf16.msra.mxu0 %v5557_v44  ;;  %v5634_v44 = vld [vmem:[%s8129_s5 + $0x5b4] ss:$28 sps:$4 sm:$0xff]  }
 0x1b4   :  { %4218 = vmatprep.subr.bf16.mxu0 %v5565_v45  ;;  %v5637_v45 = vld [vmem:[%s8129_s5 + $0x5bc] ss:$28 sps:$4 sm:$0xff]  }
 0x1b7   :  { %4219 = vmatpush1.bf16.msra.mxu0 %v5563_v46  ;;  %v5632_v46 = vld [vmem:[%s8129_s5 + $0x5b0] ss:$28 sps:$4 sm:$0xff]  }
 0x1b8   :  { %4220 = vmatprep.subr.bf16.mxu0 %v5571_v47  ;;  %v5635_v47 = vld [vmem:[%s8129_s5 + $0x5b8] ss:$28 sps:$4 sm:$0xff]  }
 0x1bb   :  { %4221 = vmatpush1.bf16.msra.mxu0 %v5569_v48  ;;  %v5640_v48 = vld [vmem:[%s8129_s5 + $0x5ec] ss:$28 sps:$4 sm:$0xff]  }
 0x1bc   :  { %4231 = vmatprep.subr.bf16.mxu0 %v5577_v49  ;;  %v5643_v49 = vld [vmem:[%s8129_s5 + $0x5f4] ss:$28 sps:$4 sm:$0xff]  }
 0x1d1   :  { %v1027_v53 = vpop.f32.mrb[4].mxu0  ;;  %v6863_v54 = vpop.f32.mrb[0].mxu1 }
 0x1d2   :  { %v1028_v55 = vadd.f32 %v1027_v53, %v316_v51  ;;  %v1029_v56 = vpop.f32.mrb[5].mxu0  ;;  %v6865_v57 = vpop.f32.mrb[1].mxu1  ;;  %v5638_v51 = vld [vmem:[%s8129_s5 + $0x5e8] ss:$28 sps:$4 sm:$0xff]  }
 0x1d3   :  { %v1030_v58 = vadd.f32 %v1029_v56, %v320_v52  ;;  %v1031_v59 = vpop.f32.mrb[6].mxu0  ;;  %v1113_v60 = vpop.f32.mrb[2].mxu1  ;;  %v5641_v52 = vld [vmem:[%s8129_s5 + $0x5f0] ss:$28 sps:$4 sm:$0xff]   ;;  %v5646_v53 = vld [vmem:[%s8129_s5 + $0x624] ss:$28 sps:$4 sm:$0xff]  }
 0x1d4   :  { %v1157_v61 = vmax.f32 %v1028_v55, 0.0  ;;  %v1032_v62 = vpop.f32.mrb[7].mxu0  ;;  %v1114_v63 = vpop.f32.mrb[3].mxu1  ;;  %v5649_v55 = vld [vmem:[%s8129_s5 + $0x62c] ss:$28 sps:$4 sm:$0xff]  }
 0x1d5   :  { %v1158_v0 = vmax.f32 %v1030_v58, 0.0  ;;  %v5644_v56 = vld [vmem:[%s8129_s5 + $0x620] ss:$28 sps:$4 sm:$0xff]   ;;  %v5647_v58 = vld [vmem:[%s8129_s5 + $0x628] ss:$28 sps:$4 sm:$0xff]   ;;  %v323_v62 = vsub.s32 2, %v6445_v24 }
 0x1d6   :  { %v6875_v4 = vpack.c.bf16 %v1157_v61, %v1157_v61  ;;  %v5652_v59 = vld [vmem:[%s8129_s5 + $0x65c] ss:$28 sps:$4 sm:$0xff]   ;;  %v5655_v60 = vld [vmem:[%s8129_s5 + $0x664] ss:$28 sps:$4 sm:$0xff]   ;;  %v335_v61 = vsub.s32 5, %v6445_v24 }
 0x1d7   :  { %v6867_v1 = vpack.c.bf16 %v1158_v0, %v1158_v0  ;;  %v5650_v63 = vld [vmem:[%s8129_s5 + $0x658] ss:$28 sps:$4 sm:$0xff]   ;;  %v5653_v0 = vld [vmem:[%s8129_s5 + $0x660] ss:$28 sps:$4 sm:$0xff]  }
 0x1d9   :  { %4058 = vmatprep.mubr.bf16.mxu1 %v6867_v1  ;;  %4222 = vmatprep.mubr.bf16.mxu0 %v6867_v1 }
 0x1da   :  { %4059 = vmatmul.mubr.bf16.vlgmr.msra.gmra.mrb[4].mxu1 %v6875_v4  ;;  %4223 = vmatmul.mubr.bf16.vlgmr.msra.gmra.mrb[16].mxu0 %v6875_v4 }
 0x1db   :  { %4068 = vmatpush1.bf16.msra.mxu1 %v5572_v2  ;;  %4232 = vmatpush1.bf16.msra.mxu0 %v5575_v3  ;;  %v327_v2 = vsub.s32 3, %v6445_v24  ;;  %v5658_v3 = vld [vmem:[%s8129_s5 + $0x694] ss:$28 sps:$4 sm:$0xff]  }
 0x1dc   :  { %4069 = vmatprep.subr.bf16.mxu1 %v5580_v5  ;;  %4233 = vmatprep.subr.bf16.mxu0 %v5583_v6  ;;  %v5661_v5 = vld [vmem:[%s8129_s5 + $0x69c] ss:$28 sps:$4 sm:$0xff]   ;;  %v336_v6 = vrot.slane %v6857_v50, %v335_v61 }
 0x1df   :  { %4070 = vmatpush1.bf16.msra.mxu1 %v5578_v7  ;;  %4234 = vmatpush1.bf16.msra.mxu0 %v5581_v8  ;;  %v324_v7 = vrot.slane %v6857_v50, %v323_v62  ;;  %v328_v8 = vrot.slane %v6857_v50, %v327_v2 }
 0x1e0   :  { %4071 = vmatprep.subr.bf16.mxu1 %v5586_v9  ;;  %4235 = vmatprep.subr.bf16.mxu0 %v5589_v10  ;;  %v5656_v9 = vld [vmem:[%s8129_s5 + $0x690] ss:$28 sps:$4 sm:$0xff]   ;;  %v5659_v10 = vld [vmem:[%s8129_s5 + $0x698] ss:$28 sps:$4 sm:$0xff]  }
 0x1e3   :  { %4072 = vmatpush1.bf16.msra.mxu1 %v5584_v11  ;;  %4236 = vmatpush1.bf16.msra.mxu0 %v5587_v12  ;;  %v5664_v11 = vld [vmem:[%s8129_s5 + $0x6cc] ss:$28 sps:$4 sm:$0xff]   ;;  %v5667_v12 = vld [vmem:[%s8129_s5 + $0x6d4] ss:$28 sps:$4 sm:$0xff]  }
 0x1e4   :  { %4073 = vmatprep.subr.bf16.mxu1 %v5592_v13  ;;  %4237 = vmatprep.subr.bf16.mxu0 %v5595_v14  ;;  %v1112_v13 = vadd.f32 %v6865_v57, %v336_v6  ;;  %v5670_v57 = vld [vmem:[%s8129_s5 + $0x704] ss:$28 sps:$4 sm:$0xff]  }
 0x1e5   :  { %v5718_v6 = vld [vmem:[%s8129_s5 + $0x8c4] ss:$28 sps:$4 sm:$0xff]  }
 0x1e7   :  { %4074 = vmatpush1.bf16.msra.mxu1 %v5590_v15  ;;  %4238 = vmatpush1.bf16.msra.mxu0 %v5593_v16 }
 0x1e8   :  { %4075 = vmatprep.subr.bf16.mxu1 %v5598_v17  ;;  %4239 = vmatprep.subr.bf16.mxu0 %v5601_v18 }
 0x1eb   :  { %4076 = vmatpush1.bf16.msra.mxu1 %v5596_v19  ;;  %4240 = vmatpush1.bf16.msra.mxu0 %v5599_v41  ;;  %v5662_v19 = vld [vmem:[%s8129_s5 + $0x6c8] ss:$28 sps:$4 sm:$0xff]   ;;  %v5665_v41 = vld [vmem:[%s8129_s5 + $0x6d0] ss:$28 sps:$4 sm:$0xff]  }
 0x1ec   :  { %4077 = vmatprep.subr.bf16.mxu1 %v5604_v20  ;;  %4241 = vmatprep.subr.bf16.mxu0 %v5607_v40 }
 0x1ef   :  { %4078 = vmatpush1.bf16.msra.mxu1 %v5602_v21  ;;  %4242 = vmatpush1.bf16.msra.mxu0 %v5605_v22  ;;  %v5673_v21 = vld [vmem:[%s8129_s5 + $0x70c] ss:$28 sps:$4 sm:$0xff]   ;;  %v1162_v22 = vmax.f32 %v1112_v13, 0.0  ;;  %v5725_v13 = vld [vmem:[%s8129_s5 + $0x900] ss:$28 sps:$4 sm:$0xff]  }
 0x1f0   :  { %4079 = vmatprep.subr.bf16.mxu1 %v5610_v23  ;;  %4243 = vmatprep.subr.bf16.mxu0 %v5613_v26 }
 0x1f3   :  { %4080 = vmatpush1.bf16.msra.mxu1 %v5608_v28  ;;  %4244 = vmatpush1.bf16.msra.mxu0 %v5611_v29  ;;  %v5668_v28 = vld [vmem:[%s8129_s5 + $0x700] ss:$28 sps:$4 sm:$0xff]  }
 0x1f4   :  { %4081 = vmatprep.subr.bf16.mxu1 %v5616_v30  ;;  %4245 = vmatprep.subr.bf16.mxu0 %v5619_v31  ;;  %v5671_v30 = vld [vmem:[%s8129_s5 + $0x708] ss:$28 sps:$4 sm:$0xff]   ;;  %v7090_v31 = vpack.c.bf16 %v1162_v22, %v1162_v22  ;;  %v331_v22 = vsub.s32 4, %v6445_v24 }
 0x1f7   :  { %4082 = vmatpush1.bf16.msra.mxu1 %v5614_v32  ;;  %4246 = vmatpush1.bf16.msra.mxu0 %v5617_v33  ;;  %v5676_v32 = vld [vmem:[%s8129_s5 + $0x73c] ss:$28 sps:$4 sm:$0xff]   ;;  %v5679_v33 = vld [vmem:[%s8129_s5 + $0x744] ss:$28 sps:$4 sm:$0xff]  }
 0x1f8   :  { %4083 = vmatprep.subr.bf16.mxu1 %v5622_v34  ;;  %4247 = vmatprep.subr.bf16.mxu0 %v5625_v35  ;;  %v5674_v34 = vld [vmem:[%s8129_s5 + $0x738] ss:$28 sps:$4 sm:$0xff]   ;;  %v5677_v35 = vld [vmem:[%s8129_s5 + $0x740] ss:$28 sps:$4 sm:$0xff]  }
 0x1fb   :  { %4084 = vmatpush1.bf16.msra.mxu1 %v5620_v36  ;;  %4248 = vmatpush1.bf16.msra.mxu0 %v5623_v37  ;;  %v5682_v36 = vld [vmem:[%s8129_s5 + $0x774] ss:$28 sps:$4 sm:$0xff]   ;;  %v5685_v37 = vld [vmem:[%s8129_s5 + $0x77c] ss:$28 sps:$4 sm:$0xff]  }
 0x1fc   :  { %4085 = vmatprep.subr.bf16.mxu1 %v5628_v38  ;;  %4249 = vmatprep.subr.bf16.mxu0 %v5631_v39  ;;  %v5680_v38 = vld [vmem:[%s8129_s5 + $0x770] ss:$28 sps:$4 sm:$0xff]   ;;  %v5683_v39 = vld [vmem:[%s8129_s5 + $0x778] ss:$28 sps:$4 sm:$0xff]  }
 0x1ff   :  { %4086 = vmatpush1.bf16.msra.mxu1 %v5626_v42  ;;  %4250 = vmatpush1.bf16.msra.mxu0 %v5629_v43  ;;  %v5688_v42 = vld [vmem:[%s8129_s5 + $0x7ac] ss:$28 sps:$4 sm:$0xff]   ;;  %v5691_v43 = vld [vmem:[%s8129_s5 + $0x7b4] ss:$28 sps:$4 sm:$0xff]  }
 0x200   :  { %4087 = vmatprep.subr.bf16.mxu1 %v5634_v44  ;;  %4251 = vmatprep.subr.bf16.mxu0 %v5637_v45  ;;  %v5686_v44 = vld [vmem:[%s8129_s5 + $0x7a8] ss:$28 sps:$4 sm:$0xff]   ;;  %v5689_v45 = vld [vmem:[%s8129_s5 + $0x7b0] ss:$28 sps:$4 sm:$0xff]  }
 0x203   :  { %4088 = vmatpush1.bf16.msra.mxu1 %v5632_v46  ;;  %4252 = vmatpush1.bf16.msra.mxu0 %v5635_v47  ;;  %v5694_v46 = vld [vmem:[%s8129_s5 + $0x7e4] ss:$28 sps:$4 sm:$0xff]   ;;  %v5697_v47 = vld [vmem:[%s8129_s5 + $0x7ec] ss:$28 sps:$4 sm:$0xff]  }
 0x204   :  { %4089 = vmatprep.subr.bf16.mxu1 %v5640_v48  ;;  %4253 = vmatprep.subr.bf16.mxu0 %v5643_v49  ;;  %v5692_v48 = vld [vmem:[%s8129_s5 + $0x7e0] ss:$28 sps:$4 sm:$0xff]   ;;  %v5695_v49 = vld [vmem:[%s8129_s5 + $0x7e8] ss:$28 sps:$4 sm:$0xff]  }
 0x207   :  { %4090 = vmatpush1.bf16.msra.mxu1 %v5638_v51  ;;  %4254 = vmatpush1.bf16.msra.mxu0 %v5641_v52  ;;  %v5700_v51 = vld [vmem:[%s8129_s5 + $0x81c] ss:$28 sps:$4 sm:$0xff]   ;;  %v5703_v52 = vld [vmem:[%s8129_s5 + $0x824] ss:$28 sps:$4 sm:$0xff]  }
 0x208   :  { %4091 = vmatprep.subr.bf16.mxu1 %v5646_v53  ;;  %4255 = vmatprep.subr.bf16.mxu0 %v5649_v55  ;;  %v5698_v53 = vld [vmem:[%s8129_s5 + $0x818] ss:$28 sps:$4 sm:$0xff]   ;;  %v5701_v55 = vld [vmem:[%s8129_s5 + $0x820] ss:$28 sps:$4 sm:$0xff]  }
 0x20b   :  { %4092 = vmatpush1.bf16.msra.mxu1 %v5644_v56  ;;  %4256 = vmatpush1.bf16.msra.mxu0 %v5647_v58  ;;  %v5706_v56 = vld [vmem:[%s8129_s5 + $0x854] ss:$28 sps:$4 sm:$0xff]   ;;  %v5709_v58 = vld [vmem:[%s8129_s5 + $0x85c] ss:$28 sps:$4 sm:$0xff]  }
 0x20c   :  { %4093 = vmatprep.subr.bf16.mxu1 %v5652_v59  ;;  %4257 = vmatprep.subr.bf16.mxu0 %v5655_v60  ;;  %v5704_v59 = vld [vmem:[%s8129_s5 + $0x850] ss:$28 sps:$4 sm:$0xff]   ;;  %v5707_v60 = vld [vmem:[%s8129_s5 + $0x858] ss:$28 sps:$4 sm:$0xff]  }
 0x20f   :  { %4094 = vmatpush1.bf16.msra.mxu1 %v5650_v63  ;;  %4258 = vmatpush1.bf16.msra.mxu0 %v5653_v0  ;;  %v5712_v63 = vld [vmem:[%s8129_s5 + $0x88c] ss:$28 sps:$4 sm:$0xff]   ;;  %v5715_v0 = vld [vmem:[%s8129_s5 + $0x894] ss:$28 sps:$4 sm:$0xff]  }
 0x210   :  { %4095 = vmatprep.subr.bf16.mxu1 %v5658_v3  ;;  %4259 = vmatprep.subr.bf16.mxu0 %v5661_v5  ;;  %v5710_v3 = vld [vmem:[%s8129_s5 + $0x888] ss:$28 sps:$4 sm:$0xff]   ;;  %v5713_v5 = vld [vmem:[%s8129_s5 + $0x890] ss:$28 sps:$4 sm:$0xff]  }
 0x211   :  { %v1068_v14 = vpop.f32.mrb[8].mxu0 }
 0x212   :  { %v1069_v15 = vadd.f32 %v1068_v14, %v324_v7  ;;  %v1070_v16 = vpop.f32.mrb[9].mxu0  ;;  %v5721_v7 = vld [vmem:[%s8129_s5 + $0x8cc] ss:$28 sps:$4 sm:$0xff]   ;;  %v5730_v14 = vld [vmem:[%s8129_s5 + $0x934] ss:$28 sps:$4 sm:$0xff]  }
 0x213   :  { %v1071_v17 = vadd.f32 %v1070_v16, %v328_v8  ;;  %v1072_v18 = vpop.f32.mrb[10].mxu0  ;;  %4096 = vmatpush1.bf16.msra.mxu1 %v5656_v9  ;;  %4260 = vmatpush1.bf16.msra.mxu0 %v5659_v10  ;;  %v5716_v8 = vld [vmem:[%s8129_s5 + $0x8c0] ss:$28 sps:$4 sm:$0xff]   ;;  %v5719_v9 = vld [vmem:[%s8129_s5 + $0x8c8] ss:$28 sps:$4 sm:$0xff]  }
 0x214   :  { %v1159_v20 = vmax.f32 %v1069_v15, 0.0  ;;  %v1073_v40 = vpop.f32.mrb[11].mxu0  ;;  %4097 = vmatprep.subr.bf16.mxu1 %v5664_v11  ;;  %4261 = vmatprep.subr.bf16.mxu0 %v5667_v12  ;;  %v5724_v10 = vld [vmem:[%s8129_s5 + $0x8fc] ss:$28 sps:$4 sm:$0xff]   ;;  %v5727_v11 = vld [vmem:[%s8129_s5 + $0x904] ss:$28 sps:$4 sm:$0xff]  }
 0x215   :  { %v1160_v23 = vmax.f32 %v1071_v17, 0.0  ;;  %v5722_v12 = vld [vmem:[%s8129_s5 + $0x8f8] ss:$28 sps:$4 sm:$0xff]   ;;  %v5728_v16 = vld [vmem:[%s8129_s5 + $0x930] ss:$28 sps:$4 sm:$0xff]  }
 0x216   :  { %v7085_v29 = vpack.c.bf16 %v1159_v20, %v1159_v20  ;;  %v5733_v15 = vld [vmem:[%s8129_s5 + $0x93c] ss:$28 sps:$4 sm:$0xff]   ;;  %v5736_v18 = vld [vmem:[%s8129_s5 + $0x96c] ss:$28 sps:$4 sm:$0xff]   ;;  %v5742_v40 = vld [vmem:[%s8129_s5 + $0x9a4] ss:$28 sps:$4 sm:$0xff]  }
 0x217   :  { %v7080_v26 = vpack.c.bf16 %v1160_v23, %v1160_v23  ;;  %4098 = vmatpush1.bf16.msra.mxu1 %v5662_v19  ;;  %4262 = vmatpush1.bf16.msra.mxu0 %v5665_v41  ;;  %v5731_v17 = vld [vmem:[%s8129_s5 + $0x938] ss:$28 sps:$4 sm:$0xff]   ;;  %v5734_v41 = vld [vmem:[%s8129_s5 + $0x968] ss:$28 sps:$4 sm:$0xff]   ;;  %v5737_v20 = vld [vmem:[%s8129_s5 + $0x970] ss:$28 sps:$4 sm:$0xff]  }
 0x218   :  { %4108 = vmatprep.subr.bf16.mxu1 %v5670_v57  ;;  %4272 = vmatprep.subr.bf16.mxu0 %v5673_v21  ;;  %v5739_v19 = vld [vmem:[%s8129_s5 + $0x974] ss:$28 sps:$4 sm:$0xff]   ;;  %v5745_v57 = vld [vmem:[%s8129_s5 + $0x9ac] ss:$28 sps:$4 sm:$0xff]   ;;  %v5740_v21 = vld [vmem:[%s8129_s5 + $0x9a0] ss:$28 sps:$4 sm:$0xff]  }
 0x219   :  { %4099 = vmatprep.mubr.bf16.mxu1 %v7080_v26  ;;  %4263 = vmatprep.mubr.bf16.mxu0 %v7080_v26  ;;  %v5743_v23 = vld [vmem:[%s8129_s5 + $0x9a8] ss:$28 sps:$4 sm:$0xff]  }
 0x21a   :  { %4100 = vmatmul.mubr.bf16.vlgmr.msra.gmra.mrb[4].mxu1 %v7085_v29  ;;  %4264 = vmatmul.mubr.bf16.vlgmr.msra.gmra.mrb[16].mxu0 %v7085_v29 }
 0x21b   :  { %4109 = vmatpush1.bf16.msra.mxu1 %v5668_v28  ;;  %4140 = vmatprep.mubr.bf16.mxu1 %v7090_v31  ;;  %v5748_v28 = vld [vmem:[%s8129_s5 + $0x9dc] ss:$28 sps:$4 sm:$0xff]  }
 0x21c   :  { %4273 = vmatpush1.bf16.msra.mxu0 %v5671_v30  ;;  %4304 = vmatprep.mubr.bf16.mxu0 %v7090_v31  ;;  %v5751_v30 = vld [vmem:[%s8129_s5 + $0x9e4] ss:$28 sps:$4 sm:$0xff]  }
 0x21d   :  { %4110 = vmatprep.subr.bf16.mxu1 %v5676_v32  ;;  %4274 = vmatprep.subr.bf16.mxu0 %v5679_v33  ;;  %v5746_v32 = vld [vmem:[%s8129_s5 + $0x9d8] ss:$28 sps:$4 sm:$0xff]   ;;  %v343_v33 = vsub.s32 7, %v6445_v24 }
 0x21f   :  { %4111 = vmatpush1.bf16.msra.mxu1 %v5674_v34  ;;  %v332_v34 = vrot.slane %v6857_v50, %v331_v22 }
 0x220   :  { %4275 = vmatpush1.bf16.msra.mxu0 %v5677_v35  ;;  %4112 = vmatprep.subr.bf16.mxu1 %v5682_v36  ;;  %v5749_v35 = vld [vmem:[%s8129_s5 + $0x9e0] ss:$28 sps:$4 sm:$0xff]   ;;  %v5754_v36 = vld [vmem:[%s8129_s5 + $0xa14] ss:$28 sps:$4 sm:$0xff]  }
 0x221   :  { %4276 = vmatprep.subr.bf16.mxu0 %v5685_v37  ;;  %v5757_v37 = vld [vmem:[%s8129_s5 + $0xa1c] ss:$28 sps:$4 sm:$0xff]  }
 0x223   :  { %4113 = vmatpush1.bf16.msra.mxu1 %v5680_v38  ;;  %v344_v38 = vrot.slane %v6857_v50, %v343_v33  ;;  %v5811_v33 = vld [vmem:[%s8129_s5 + $0xc14] ss:$28 sps:$4 sm:$0xff]  }
 0x224   :  { %4277 = vmatpush1.bf16.msra.mxu0 %v5683_v39  ;;  %4114 = vmatprep.subr.bf16.mxu1 %v5688_v42  ;;  %v5752_v39 = vld [vmem:[%s8129_s5 + $0xa10] ss:$28 sps:$4 sm:$0xff]   ;;  %v1110_v42 = vadd.f32 %v6863_v54, %v332_v34  ;;  %v5806_v34 = vld [vmem:[%s8129_s5 + $0xc08] ss:$28 sps:$4 sm:$0xff]  }
 0x225   :  { %4278 = vmatprep.subr.bf16.mxu0 %v5691_v43  ;;  %v5755_v43 = vld [vmem:[%s8129_s5 + $0xa18] ss:$28 sps:$4 sm:$0xff]  }
 0x227   :  { %4115 = vmatpush1.bf16.msra.mxu1 %v5686_v44  ;;  %v5760_v44 = vld [vmem:[%s8129_s5 + $0xa4c] ss:$28 sps:$4 sm:$0xff]  }
 0x228   :  { %4279 = vmatpush1.bf16.msra.mxu0 %v5689_v45  ;;  %4116 = vmatprep.subr.bf16.mxu1 %v5694_v46  ;;  %v5763_v46 = vld [vmem:[%s8129_s5 + $0xa54] ss:$28 sps:$4 sm:$0xff]  }
 0x229   :  { %4280 = vmatprep.subr.bf16.mxu0 %v5697_v47 }
 0x22b   :  { %4117 = vmatpush1.bf16.msra.mxu1 %v5692_v48 }
 0x22c   :  { %4281 = vmatpush1.bf16.msra.mxu0 %v5695_v49  ;;  %4118 = vmatprep.subr.bf16.mxu1 %v5700_v51  ;;  %v5758_v49 = vld [vmem:[%s8129_s5 + $0xa48] ss:$28 sps:$4 sm:$0xff]   ;;  %v1161_v51 = vmax.f32 %v1110_v42, 0.0  ;;  %v5820_v42 = vld [vmem:[%s8129_s5 + $0xc7c] ss:$28 sps:$4 sm:$0xff]  }
 0x22d   :  { %4282 = vmatprep.subr.bf16.mxu0 %v5703_v52 }
 0x22f   :  { %4119 = vmatpush1.bf16.msra.mxu1 %v5698_v53  ;;  %v5761_v53 = vld [vmem:[%s8129_s5 + $0xa50] ss:$28 sps:$4 sm:$0xff]  }
 0x230   :  { %4283 = vmatpush1.bf16.msra.mxu0 %v5701_v55  ;;  %4120 = vmatprep.subr.bf16.mxu1 %v5706_v56  ;;  %v5766_v55 = vld [vmem:[%s8129_s5 + $0xa84] ss:$28 sps:$4 sm:$0xff]   ;;  %v5769_v56 = vld [vmem:[%s8129_s5 + $0xa8c] ss:$28 sps:$4 sm:$0xff]  }
 0x231   :  { %4284 = vmatprep.subr.bf16.mxu0 %v5709_v58 }
 0x233   :  { %4121 = vmatpush1.bf16.msra.mxu1 %v5704_v59  ;;  %v5764_v59 = vld [vmem:[%s8129_s5 + $0xa80] ss:$28 sps:$4 sm:$0xff]  }
 0x234   :  { %4285 = vmatpush1.bf16.msra.mxu0 %v5707_v60  ;;  %4122 = vmatprep.subr.bf16.mxu1 %v5712_v63  ;;  %v7296_v60 = vpack.c.bf16 %v1161_v51, %v1161_v51  ;;  %v5767_v63 = vld [vmem:[%s8129_s5 + $0xa88] ss:$28 sps:$4 sm:$0xff]  }
 0x235   :  { %4286 = vmatprep.subr.bf16.mxu0 %v5715_v0  ;;  %v5772_v0 = vld [vmem:[%s8129_s5 + $0xabc] ss:$28 sps:$4 sm:$0xff]   ;;  %v5832_v51 = vld [vmem:[%s8129_s5 + $0xcec] ss:$28 sps:$4 sm:$0xff]  }
 0x237   :  { %4123 = vmatpush1.bf16.msra.mxu1 %v5710_v3 }
 0x238   :  { %4287 = vmatpush1.bf16.msra.mxu0 %v5713_v5  ;;  %4124 = vmatprep.subr.bf16.mxu1 %v5718_v6  ;;  %v5775_v5 = vld [vmem:[%s8129_s5 + $0xac4] ss:$28 sps:$4 sm:$0xff]   ;;  %v5770_v6 = vld [vmem:[%s8129_s5 + $0xab8] ss:$28 sps:$4 sm:$0xff]  }
 0x239   :  { %4288 = vmatprep.subr.bf16.mxu0 %v5721_v7  ;;  %v5773_v7 = vld [vmem:[%s8129_s5 + $0xac0] ss:$28 sps:$4 sm:$0xff]  }
 0x23b   :  { %4125 = vmatpush1.bf16.msra.mxu1 %v5716_v8  ;;  %v5778_v8 = vld [vmem:[%s8129_s5 + $0xaf4] ss:$28 sps:$4 sm:$0xff]  }
 0x23c   :  { %4289 = vmatpush1.bf16.msra.mxu0 %v5719_v9  ;;  %4126 = vmatprep.subr.bf16.mxu1 %v5724_v10  ;;  %v5781_v9 = vld [vmem:[%s8129_s5 + $0xafc] ss:$28 sps:$4 sm:$0xff]   ;;  %v5776_v10 = vld [vmem:[%s8129_s5 + $0xaf0] ss:$28 sps:$4 sm:$0xff]  }
 0x23d   :  { %4290 = vmatprep.subr.bf16.mxu0 %v5727_v11  ;;  %v5779_v11 = vld [vmem:[%s8129_s5 + $0xaf8] ss:$28 sps:$4 sm:$0xff]  }
 0x23f   :  { %4127 = vmatpush1.bf16.msra.mxu1 %v5722_v12  ;;  %v5784_v12 = vld [vmem:[%s8129_s5 + $0xb2c] ss:$28 sps:$4 sm:$0xff]  }
 0x240   :  { %4291 = vmatpush1.bf16.msra.mxu0 %v5725_v13  ;;  %4128 = vmatprep.subr.bf16.mxu1 %v5730_v14  ;;  %v5787_v13 = vld [vmem:[%s8129_s5 + $0xb34] ss:$28 sps:$4 sm:$0xff]   ;;  %v5782_v14 = vld [vmem:[%s8129_s5 + $0xb28] ss:$28 sps:$4 sm:$0xff]  }
 0x241   :  { %4292 = vmatprep.subr.bf16.mxu0 %v5733_v15  ;;  %v5785_v15 = vld [vmem:[%s8129_s5 + $0xb30] ss:$28 sps:$4 sm:$0xff]  }
 0x243   :  { %4129 = vmatpush1.bf16.msra.mxu1 %v5728_v16  ;;  %v5790_v16 = vld [vmem:[%s8129_s5 + $0xb64] ss:$28 sps:$4 sm:$0xff]  }
 0x244   :  { %4293 = vmatpush1.bf16.msra.mxu0 %v5731_v17  ;;  %4130 = vmatprep.subr.bf16.mxu1 %v5736_v18  ;;  %v5793_v17 = vld [vmem:[%s8129_s5 + $0xb6c] ss:$28 sps:$4 sm:$0xff]   ;;  %v5788_v18 = vld [vmem:[%s8129_s5 + $0xb60] ss:$28 sps:$4 sm:$0xff]  }
 0x245   :  { %4294 = vmatprep.subr.bf16.mxu0 %v5739_v19  ;;  %v5791_v19 = vld [vmem:[%s8129_s5 + $0xb68] ss:$28 sps:$4 sm:$0xff]  }
 0x247   :  { %4131 = vmatpush1.bf16.msra.mxu1 %v5734_v41  ;;  %v5796_v41 = vld [vmem:[%s8129_s5 + $0xb9c] ss:$28 sps:$4 sm:$0xff]  }
 0x248   :  { %4295 = vmatpush1.bf16.msra.mxu0 %v5737_v20  ;;  %4132 = vmatprep.subr.bf16.mxu1 %v5742_v40  ;;  %v5799_v20 = vld [vmem:[%s8129_s5 + $0xba4] ss:$28 sps:$4 sm:$0xff]   ;;  %v5794_v40 = vld [vmem:[%s8129_s5 + $0xb98] ss:$28 sps:$4 sm:$0xff]  }
 0x249   :  { %4296 = vmatprep.subr.bf16.mxu0 %v5745_v57  ;;  %v5797_v57 = vld [vmem:[%s8129_s5 + $0xba0] ss:$28 sps:$4 sm:$0xff]  }
 0x24b   :  { %4133 = vmatpush1.bf16.msra.mxu1 %v5740_v21  ;;  %v5802_v21 = vld [vmem:[%s8129_s5 + $0xbd4] ss:$28 sps:$4 sm:$0xff]  }
 0x24c   :  { %4297 = vmatpush1.bf16.msra.mxu0 %v5743_v23  ;;  %4134 = vmatprep.subr.bf16.mxu1 %v5748_v28  ;;  %v5805_v23 = vld [vmem:[%s8129_s5 + $0xbdc] ss:$28 sps:$4 sm:$0xff]   ;;  %v5800_v28 = vld [vmem:[%s8129_s5 + $0xbd0] ss:$28 sps:$4 sm:$0xff]  }
 0x24d   :  { %4298 = vmatprep.subr.bf16.mxu0 %v5751_v30  ;;  %v5803_v30 = vld [vmem:[%s8129_s5 + $0xbd8] ss:$28 sps:$4 sm:$0xff]  }
 0x24f   :  { %4135 = vmatpush1.bf16.msra.mxu1 %v5746_v32  ;;  %v5808_v32 = vld [vmem:[%s8129_s5 + $0xc0c] ss:$28 sps:$4 sm:$0xff]  }
 0x250   :  { %4299 = vmatpush1.bf16.msra.mxu0 %v5749_v35  ;;  %4136 = vmatprep.subr.bf16.mxu1 %v5754_v36  ;;  %v5809_v35 = vld [vmem:[%s8129_s5 + $0xc10] ss:$28 sps:$4 sm:$0xff]   ;;  %v5814_v36 = vld [vmem:[%s8129_s5 + $0xc44] ss:$28 sps:$4 sm:$0xff]  }
 0x251   :  { %v7276_v45 = vpop.f32.mrb[12].mxu0  ;;  %4300 = vmatprep.subr.bf16.mxu0 %v5757_v37  ;;  %v5817_v37 = vld [vmem:[%s8129_s5 + $0xc4c] ss:$28 sps:$4 sm:$0xff]  }
 0x252   :  { %v1152_v47 = vpop.f32.mrb[13].mxu0 }
 0x253   :  { %v1153_v48 = vadd.f32 %v1152_v47, %v344_v38  ;;  %v1154_v54 = vpop.f32.mrb[14].mxu0  ;;  %4137 = vmatpush1.bf16.msra.mxu1 %v5752_v39  ;;  %v5812_v38 = vld [vmem:[%s8129_s5 + $0xc40] ss:$28 sps:$4 sm:$0xff]   ;;  %v5815_v39 = vld [vmem:[%s8129_s5 + $0xc48] ss:$28 sps:$4 sm:$0xff]  }
 0x254   :  { %4301 = vmatpush1.bf16.msra.mxu0 %v5755_v43  ;;  %v1155_v52 = vpop.f32.mrb[15].mxu0  ;;  %4138 = vmatprep.subr.bf16.mxu1 %v5760_v44  ;;  %v5823_v43 = vld [vmem:[%s8129_s5 + $0xc84] ss:$28 sps:$4 sm:$0xff]   ;;  %v5818_v44 = vld [vmem:[%s8129_s5 + $0xc78] ss:$28 sps:$4 sm:$0xff]  }
 0x255   :  { %4302 = vmatprep.subr.bf16.mxu0 %v5763_v46  ;;  %v1164_v58 = vmax.f32 %v1153_v48, 0.0  ;;  %v5821_v46 = vld [vmem:[%s8129_s5 + $0xc80] ss:$28 sps:$4 sm:$0xff]   ;;  %v5826_v47 = vld [vmem:[%s8129_s5 + $0xcb4] ss:$28 sps:$4 sm:$0xff]  }
 0x256   :  { %v5829_v48 = vld [vmem:[%s8129_s5 + $0xcbc] ss:$28 sps:$4 sm:$0xff]   ;;  %v5824_v54 = vld [vmem:[%s8129_s5 + $0xcb0] ss:$28 sps:$4 sm:$0xff]  }
 0x257   :  { %4139 = vmatpush1.bf16.msra.mxu1 %v5758_v49  ;;  %v7304_v3 = vpack.c.bf16 %v1164_v58, %v1164_v58  ;;  %v5827_v49 = vld [vmem:[%s8129_s5 + $0xcb8] ss:$28 sps:$4 sm:$0xff]   ;;  %v5841_v58 = vld [vmem:[%s8129_s5 + $0xd2c] ss:$28 sps:$4 sm:$0xff]  }
 0x258   :  { %4303 = vmatpush1.bf16.msra.mxu0 %v5761_v53  ;;  %4149 = vmatprep.subr.bf16.mxu1 %v5766_v55  ;;  %v5835_v52 = vld [vmem:[%s8129_s5 + $0xcf4] ss:$28 sps:$4 sm:$0xff]   ;;  %v5830_v53 = vld [vmem:[%s8129_s5 + $0xce8] ss:$28 sps:$4 sm:$0xff]  }
 0x259   :  { %4313 = vmatprep.subr.bf16.mxu0 %v5769_v56  ;;  %v5833_v55 = vld [vmem:[%s8129_s5 + $0xcf0] ss:$28 sps:$4 sm:$0xff]   ;;  %v5838_v56 = vld [vmem:[%s8129_s5 + $0xd24] ss:$28 sps:$4 sm:$0xff]  }
 0x25a   :  { %4141 = vmatmul.mubr.bf16.vlgmr.msra.gmra.mrb[4].mxu1 %v7296_v60 }
 0x25b   :  { %4305 = vmatmul.mubr.bf16.vlgmr.msra.gmra.mrb[16].mxu0 %v7296_v60  ;;  %4150 = vmatpush1.bf16.msra.mxu1 %v5764_v59  ;;  %v5836_v59 = vld [vmem:[%s8129_s5 + $0xd20] ss:$28 sps:$4 sm:$0xff]  }
 0x25c   :  { %4181 = vmatprep.mubr.bf16.mxu1 %v7304_v3  ;;  %4314 = vmatpush1.bf16.msra.mxu0 %v5767_v63  ;;  %v339_v63 = vsub.s32 6, %v6445_v24 }
 0x25d   :  { %4345 = vmatprep.mubr.bf16.mxu0 %v7304_v3  ;;  %4151 = vmatprep.subr.bf16.mxu1 %v5772_v0  ;;  %v5839_v0 = vld [vmem:[%s8129_s5 + $0xd28] ss:$28 sps:$4 sm:$0xff]  }
 0x25e   :  { %4315 = vmatprep.subr.bf16.mxu0 %v5775_v5  ;;  %v5844_v5 = vld [vmem:[%s8129_s5 + $0xd5c] ss:$28 sps:$4 sm:$0xff]  }
 0x25f   :  { %4152 = vmatpush1.bf16.msra.mxu1 %v5770_v6  ;;  %v5847_v6 = vld [vmem:[%s8129_s5 + $0xd64] ss:$28 sps:$4 sm:$0xff]  }
 0x260   :  { %4316 = vmatpush1.bf16.msra.mxu0 %v5773_v7  ;;  %4153 = vmatprep.subr.bf16.mxu1 %v5778_v8  ;;  %v5842_v7 = vld [vmem:[%s8129_s5 + $0xd58] ss:$28 sps:$4 sm:$0xff]   ;;  %v340_v8 = vrot.slane %v6857_v50, %v339_v63  ;;  %v5848_v50 = vld [vmem:[%s8129_s5 + $0xd90] ss:$28 sps:$4 sm:$0xff]  }
 0x261   :  { %4317 = vmatprep.subr.bf16.mxu0 %v5781_v9  ;;  %v5845_v9 = vld [vmem:[%s8129_s5 + $0xd60] ss:$28 sps:$4 sm:$0xff]  }
 0x263   :  { %4154 = vmatpush1.bf16.msra.mxu1 %v5776_v10  ;;  %v5850_v10 = vld [vmem:[%s8129_s5 + $0xd94] ss:$28 sps:$4 sm:$0xff]  }
 0x264   :  { %4318 = vmatpush1.bf16.msra.mxu0 %v5779_v11  ;;  %4155 = vmatprep.subr.bf16.mxu1 %v5784_v12  ;;  %v5853_v11 = vld [vmem:[%s8129_s5 + $0xd9c] ss:$28 sps:$4 sm:$0xff]   ;;  %v1151_v12 = vadd.f32 %v7276_v45, %v340_v8  ;;  %v5854_v45 = vld [vmem:[%s8129_s5 + $0xdc8] ss:$28 sps:$4 sm:$0xff]   ;;  %v5908_v8 = vld [vmem:[%s8129_s5 + $0x590] ss:$28 sps:$4 sm:$0xff]  }
 0x265   :  { %4319 = vmatprep.subr.bf16.mxu0 %v5787_v13  ;;  %v5851_v13 = vld [vmem:[%s8129_s5 + $0xd98] ss:$28 sps:$4 sm:$0xff]  }
 0x267   :  { %4156 = vmatpush1.bf16.msra.mxu1 %v5782_v14  ;;  %v5856_v14 = vld [vmem:[%s8129_s5 + $0xdcc] ss:$28 sps:$4 sm:$0xff]  }
 0x268   :  { %4320 = vmatpush1.bf16.msra.mxu0 %v5785_v15  ;;  %4157 = vmatprep.subr.bf16.mxu1 %v5790_v16  ;;  %v5859_v15 = vld [vmem:[%s8129_s5 + $0xdd4] ss:$28 sps:$4 sm:$0xff]   ;;  %v1163_v16 = vmax.f32 %v1151_v12, 0.0  ;;  %v5910_v12 = vld [vmem:[%s8129_s5 + $0x240] ss:$28 sps:$4 sm:$0xff]  }
 0x269   :  { %4321 = vmatprep.subr.bf16.mxu0 %v5793_v17  ;;  %v5857_v17 = vld [vmem:[%s8129_s5 + $0xdd0] ss:$28 sps:$4 sm:$0xff]  }
 0x26b   :  { %4158 = vmatpush1.bf16.msra.mxu1 %v5788_v18  ;;  %v5862_v18 = vld [vmem:[%s8129_s5 + $0x14] ss:$28 sps:$4 sm:$0xff]  }
 0x26c   :  { %4322 = vmatpush1.bf16.msra.mxu0 %v5791_v19  ;;  %4159 = vmatprep.subr.bf16.mxu1 %v5796_v41  ;;  %v5863_v19 = vld [vmem:[%s8129_s5 + $0x1d8] ss:$28 sps:$4 sm:$0xff]   ;;  %v5860_v41 = vld [vmem:[%s8129_s5 + $0x10] ss:$28 sps:$4 sm:$0xff]  }
 0x26d   :  { %4323 = vmatprep.subr.bf16.mxu0 %v5799_v20  ;;  %v7501_v20 = vpack.c.bf16 %v1163_v16, %v1163_v16  ;;  %v5919_v16 = vld [vmem:[%s8129_s5 + $0x440] ss:$28 sps:$4 sm:$0xff]  }
 0x26f   :  { %4160 = vmatpush1.bf16.msra.mxu1 %v5794_v40  ;;  %v5864_v40 = vld [vmem:[%s8129_s5 + $0x18] ss:$28 sps:$4 sm:$0xff]  }
 0x270   :  { %4324 = vmatpush1.bf16.msra.mxu0 %v5797_v57  ;;  %4161 = vmatprep.subr.bf16.mxu1 %v5802_v21  ;;  %v5867_v57 = vld [vmem:[%s8129_s5 + $0x4c] ss:$28 sps:$4 sm:$0xff]  }
 0x271   :  { %4325 = vmatprep.subr.bf16.mxu0 %v5805_v23  ;;  %v5868_v21 = vld [vmem:[%s8129_s5 + $0x210] ss:$28 sps:$4 sm:$0xff]   ;;  %v5865_v23 = vld [vmem:[%s8129_s5 + $0x48] ss:$28 sps:$4 sm:$0xff]  }
 0x273   :  { %4162 = vmatpush1.bf16.msra.mxu1 %v5800_v28  ;;  %v5869_v28 = vld [vmem:[%s8129_s5 + $0x50] ss:$28 sps:$4 sm:$0xff]  }
 0x274   :  { %4326 = vmatpush1.bf16.msra.mxu0 %v5803_v30  ;;  %4163 = vmatprep.subr.bf16.mxu1 %v5808_v32  ;;  %v5872_v30 = vld [vmem:[%s8129_s5 + $0x84] ss:$28 sps:$4 sm:$0xff]  }
 0x275   :  { %4327 = vmatprep.subr.bf16.mxu0 %v5811_v33  ;;  %v5873_v32 = vld [vmem:[%s8129_s5 + $0x248] ss:$28 sps:$4 sm:$0xff]   ;;  %v5870_v33 = vld [vmem:[%s8129_s5 + $0x80] ss:$28 sps:$4 sm:$0xff]  }
 0x277   :  { %4164 = vmatpush1.bf16.msra.mxu1 %v5806_v34  ;;  %v5874_v34 = vld [vmem:[%s8129_s5 + $0x88] ss:$28 sps:$4 sm:$0xff]  }
 0x278   :  { %4328 = vmatpush1.bf16.msra.mxu0 %v5809_v35  ;;  %4165 = vmatprep.subr.bf16.mxu1 %v5814_v36  ;;  %v5878_v35 = vld [vmem:[%s8129_s5 + $0x280] ss:$28 sps:$4 sm:$0xff]   ;;  %v5875_v36 = vld [vmem:[%s8129_s5 + $0xb8] ss:$28 sps:$4 sm:$0xff]  }
 0x279   :  { %4329 = vmatprep.subr.bf16.mxu0 %v5817_v37  ;;  %v5879_v37 = vld [vmem:[%s8129_s5 + $0xc0] ss:$28 sps:$4 sm:$0xff]  }
 0x27b   :  { %4166 = vmatpush1.bf16.msra.mxu1 %v5812_v38  ;;  %v5882_v38 = vld [vmem:[%s8129_s5 + $0xf4] ss:$28 sps:$4 sm:$0xff]  }
 0x27c   :  { %4330 = vmatpush1.bf16.msra.mxu0 %v5815_v39  ;;  %4167 = vmatprep.subr.bf16.mxu1 %v5820_v42  ;;  %v5883_v39 = vld [vmem:[%s8129_s5 + $0x2b8] ss:$28 sps:$4 sm:$0xff]   ;;  %v5880_v42 = vld [vmem:[%s8129_s5 + $0xf0] ss:$28 sps:$4 sm:$0xff]  }
 0x27d   :  { %4331 = vmatprep.subr.bf16.mxu0 %v5823_v43  ;;  %v5884_v43 = vld [vmem:[%s8129_s5 + $0xf8] ss:$28 sps:$4 sm:$0xff]  }
 0x27f   :  { %4168 = vmatpush1.bf16.msra.mxu1 %v5818_v44  ;;  %v5887_v44 = vld [vmem:[%s8129_s5 + $0x12c] ss:$28 sps:$4 sm:$0xff]  }
 0x280   :  { %4332 = vmatpush1.bf16.msra.mxu0 %v5821_v46  ;;  %4169 = vmatprep.subr.bf16.mxu1 %v5826_v47  ;;  %v5888_v46 = vld [vmem:[%s8129_s5 + $0x2f0] ss:$28 sps:$4 sm:$0xff]   ;;  %v5885_v47 = vld [vmem:[%s8129_s5 + $0x128] ss:$28 sps:$4 sm:$0xff]  }
 0x281   :  { %4333 = vmatprep.subr.bf16.mxu0 %v5829_v48  ;;  %v5889_v48 = vld [vmem:[%s8129_s5 + $0x130] ss:$28 sps:$4 sm:$0xff]  }
 0x283   :  { %4170 = vmatpush1.bf16.msra.mxu1 %v5824_v54  ;;  %v5892_v54 = vld [vmem:[%s8129_s5 + $0x164] ss:$28 sps:$4 sm:$0xff]  }
 0x284   :  { %4334 = vmatpush1.bf16.msra.mxu0 %v5827_v49  ;;  %4171 = vmatprep.subr.bf16.mxu1 %v5832_v51  ;;  %v5893_v49 = vld [vmem:[%s8129_s5 + $0x328] ss:$28 sps:$4 sm:$0xff]   ;;  %v5890_v51 = vld [vmem:[%s8129_s5 + $0x160] ss:$28 sps:$4 sm:$0xff]  }
 0x285   :  { %4335 = vmatprep.subr.bf16.mxu0 %v5835_v52  ;;  %v5894_v52 = vld [vmem:[%s8129_s5 + $0x168] ss:$28 sps:$4 sm:$0xff]  }
 0x287   :  { %4172 = vmatpush1.bf16.msra.mxu1 %v5830_v53  ;;  %v5897_v53 = vld [vmem:[%s8129_s5 + $0x19c] ss:$28 sps:$4 sm:$0xff]  }
 0x288   :  { %4336 = vmatpush1.bf16.msra.mxu0 %v5833_v55  ;;  %4173 = vmatprep.subr.bf16.mxu1 %v5838_v56  ;;  %v5898_v55 = vld [vmem:[%s8129_s5 + $0x360] ss:$28 sps:$4 sm:$0xff]   ;;  %v5895_v56 = vld [vmem:[%s8129_s5 + $0x198] ss:$28 sps:$4 sm:$0xff]  }
 0x289   :  { %4337 = vmatprep.subr.bf16.mxu0 %v5841_v58  ;;  %v5899_v58 = vld [vmem:[%s8129_s5 + $0x1a0] ss:$28 sps:$4 sm:$0xff]  }
 0x28b   :  { %4174 = vmatpush1.bf16.msra.mxu1 %v5836_v59  ;;  %v5902_v59 = vld [vmem:[%s8129_s5 + $0x1d4] ss:$28 sps:$4 sm:$0xff]  }
 0x28c   :  { %4338 = vmatpush1.bf16.msra.mxu0 %v5839_v0  ;;  %4175 = vmatprep.subr.bf16.mxu1 %v5844_v5  ;;  %v5903_v0 = vld [vmem:[%s8129_s5 + $0x558] ss:$28 sps:$4 sm:$0xff]   ;;  %v5900_v5 = vld [vmem:[%s8129_s5 + $0x1d0] ss:$28 sps:$4 sm:$0xff]  }
 0x28d   :  { %4339 = vmatprep.subr.bf16.mxu0 %v5847_v6  ;;  %v5904_v6 = vld [vmem:[%s8129_s5 + $0x398] ss:$28 sps:$4 sm:$0xff]  }
 0x28f   :  { %4176 = vmatpush1.bf16.msra.mxu1 %v5842_v7  ;;  %v5907_v7 = vld [vmem:[%s8129_s5 + $0x20c] ss:$28 sps:$4 sm:$0xff]  }
 0x290   :  { %4340 = vmatpush1.bf16.msra.mxu0 %v5845_v9  ;;  %4177 = vmatprep.subr.bf16.mxu1 %v5850_v10  ;;  %v5905_v9 = vld [vmem:[%s8129_s5 + $0x208] ss:$28 sps:$4 sm:$0xff]   ;;  %v5909_v10 = vld [vmem:[%s8129_s5 + $0x3d0] ss:$28 sps:$4 sm:$0xff]  }
 0x291   :  { %4341 = vmatprep.subr.bf16.mxu0 %v5853_v11  ;;  %v5912_v11 = vld [vmem:[%s8129_s5 + $0x244] ss:$28 sps:$4 sm:$0xff]  }
 0x293   :  { %4178 = vmatpush1.bf16.msra.mxu1 %v5848_v50  ;;  %v5913_v50 = vld [vmem:[%s8129_s5 + $0x5c8] ss:$28 sps:$4 sm:$0xff]  }
 0x294   :  { %4342 = vmatpush1.bf16.msra.mxu0 %v5851_v13  ;;  %4179 = vmatprep.subr.bf16.mxu1 %v5856_v14  ;;  %v5914_v13 = vld [vmem:[%s8129_s5 + $0x408] ss:$28 sps:$4 sm:$0xff]   ;;  %v5917_v14 = vld [vmem:[%s8129_s5 + $0x27c] ss:$28 sps:$4 sm:$0xff]  }
 0x295   :  { %4343 = vmatprep.subr.bf16.mxu0 %v5859_v15  ;;  %v5918_v15 = vld [vmem:[%s8129_s5 + $0x600] ss:$28 sps:$4 sm:$0xff]  }
 0x297   :  { %4180 = vmatpush1.bf16.msra.mxu1 %v5854_v45  ;;  %v5915_v45 = vld [vmem:[%s8129_s5 + $0x278] ss:$28 sps:$4 sm:$0xff]  }
 0x298   :  { %4344 = vmatpush1.bf16.msra.mxu0 %v5857_v17  ;;  %4354 = vmatprep.subr.bf16.mxu1 %v5862_v18  ;;  %v5922_v17 = vld [vmem:[%s8129_s5 + $0x2b4] ss:$28 sps:$4 sm:$0xff]  }
 0x299   :  { %5320 = vmatprep.subr.bf16.mxu0 %v5863_v19  ;;  %v5923_v18 = vld [vmem:[%s8129_s5 + $0x638] ss:$28 sps:$4 sm:$0xff]   ;;  %v5920_v19 = vld [vmem:[%s8129_s5 + $0x2b0] ss:$28 sps:$4 sm:$0xff]  }
 0x29a   :  { %4182 = vmatmul.mubr.bf16.vlgmr.msra.gmra.mrb[4].mxu1 %v7501_v20 }
 0x29b   :  { %4346 = vmatmul.mubr.bf16.vlgmr.msra.gmra.mrb[16].mxu0 %v7501_v20  ;;  %4355 = vmatpush1.bf16.msra.mxu1 %v5860_v41  ;;  %v5924_v41 = vld [vmem:[%s8129_s5 + $0x478] ss:$28 sps:$4 sm:$0xff]  }
 0x29c   :  { %4386 = vmatprep.mubr.bf16.mxu1 %v6867_v1  ;;  %5321 = vmatpush3.bf16.msra.mxu0 %v5864_v40  ;;  %v5927_v40 = vld [vmem:[%s8129_s5 + $0x2ec] ss:$28 sps:$4 sm:$0xff]  }
 0x29d   :  { %4550 = vmatprep.mubr.bf16.mxu0 %v6867_v1  ;;  %4356 = vmatprep.subr.bf16.mxu1 %v5867_v57  ;;  %v5877_v1 = vld [vmem:[%s8129_s5 + $0xbc] ss:$28 sps:$4 sm:$0xff]   ;;  %v5928_v57 = vld [vmem:[%s8129_s5 + $0x670] ss:$28 sps:$4 sm:$0xff]  }
 0x29e   :  { %5322 = vmatprep.subr.bf16.mxu0 %v5868_v21  ;;  %v5925_v21 = vld [vmem:[%s8129_s5 + $0x2e8] ss:$28 sps:$4 sm:$0xff]  }
 0x29f   :  { %4357 = vmatpush1.bf16.msra.mxu1 %v5865_v23  ;;  %v5929_v23 = vld [vmem:[%s8129_s5 + $0x4b0] ss:$28 sps:$4 sm:$0xff]  }
 0x2a0   :  { %5323 = vmatpush3.bf16.msra.mxu0 %v5869_v28  ;;  %4358 = vmatprep.subr.bf16.mxu1 %v5872_v30  ;;  %v5932_v28 = vld [vmem:[%s8129_s5 + $0x324] ss:$28 sps:$4 sm:$0xff]  }
 0x2a1   :  { %5324 = vmatprep.subr.bf16.mxu0 %v5873_v32  ;;  %v5933_v30 = vld [vmem:[%s8129_s5 + $0x6a8] ss:$28 sps:$4 sm:$0xff]   ;;  %v5930_v32 = vld [vmem:[%s8129_s5 + $0x320] ss:$28 sps:$4 sm:$0xff]  }
 0x2a3   :  { %4359 = vmatpush1.bf16.msra.mxu1 %v5870_v33  ;;  %v5934_v33 = vld [vmem:[%s8129_s5 + $0x4e8] ss:$28 sps:$4 sm:$0xff]  }
 0x2a4   :  { %5325 = vmatpush3.bf16.msra.mxu0 %v5874_v34  ;;  %4360 = vmatprep.subr.bf16.mxu1 %v5877_v1  ;;  %v5937_v34 = vld [vmem:[%s8129_s5 + $0x35c] ss:$28 sps:$4 sm:$0xff]  }
 0x2a5   :  { %5326 = vmatprep.subr.bf16.mxu0 %v5878_v35  ;;  %v5938_v1 = vld [vmem:[%s8129_s5 + $0x6e0] ss:$28 sps:$4 sm:$0xff]   ;;  %v5935_v35 = vld [vmem:[%s8129_s5 + $0x358] ss:$28 sps:$4 sm:$0xff]  }
 0x2a7   :  { %4361 = vmatpush1.bf16.msra.mxu1 %v5875_v36  ;;  %v5939_v36 = vld [vmem:[%s8129_s5 + $0x520] ss:$28 sps:$4 sm:$0xff]  }
 0x2a8   :  { %5327 = vmatpush3.bf16.msra.mxu0 %v5879_v37  ;;  %4362 = vmatprep.subr.bf16.mxu1 %v5882_v38  ;;  %v5942_v37 = vld [vmem:[%s8129_s5 + $0x394] ss:$28 sps:$4 sm:$0xff]  }
 0x2a9   :  { %5328 = vmatprep.subr.bf16.mxu0 %v5883_v39  ;;  %v5943_v38 = vld [vmem:[%s8129_s5 + $0x8d8] ss:$28 sps:$4 sm:$0xff]   ;;  %v5940_v39 = vld [vmem:[%s8129_s5 + $0x390] ss:$28 sps:$4 sm:$0xff]  }
 0x2ab   :  { %4363 = vmatpush1.bf16.msra.mxu1 %v5880_v42  ;;  %v5944_v42 = vld [vmem:[%s8129_s5 + $0x718] ss:$28 sps:$4 sm:$0xff]  }
 0x2ac   :  { %5329 = vmatpush3.bf16.msra.mxu0 %v5884_v43  ;;  %4364 = vmatprep.subr.bf16.mxu1 %v5887_v44  ;;  %v5947_v43 = vld [vmem:[%s8129_s5 + $0x3cc] ss:$28 sps:$4 sm:$0xff]  }
 0x2ad   :  { %5330 = vmatprep.subr.bf16.mxu0 %v5888_v46  ;;  %v5948_v44 = vld [vmem:[%s8129_s5 + $0x910] ss:$28 sps:$4 sm:$0xff]   ;;  %v5945_v46 = vld [vmem:[%s8129_s5 + $0x3c8] ss:$28 sps:$4 sm:$0xff]  }
 0x2af   :  { %4365 = vmatpush1.bf16.msra.mxu1 %v5885_v47  ;;  %v5949_v47 = vld [vmem:[%s8129_s5 + $0x750] ss:$28 sps:$4 sm:$0xff]  }
 0x2b0   :  { %5331 = vmatpush3.bf16.msra.mxu0 %v5889_v48  ;;  %4366 = vmatprep.subr.bf16.mxu1 %v5892_v54  ;;  %v5953_v48 = vld [vmem:[%s8129_s5 + $0x948] ss:$28 sps:$4 sm:$0xff]  }
 0x2b1   :  { %5332 = vmatprep.subr.bf16.mxu0 %v5893_v49  ;;  %v5954_v54 = vld [vmem:[%s8129_s5 + $0x788] ss:$28 sps:$4 sm:$0xff]   ;;  %v5957_v49 = vld [vmem:[%s8129_s5 + $0x43c] ss:$28 sps:$4 sm:$0xff]  }
 0x2b3   :  { %4367 = vmatpush1.bf16.msra.mxu1 %v5890_v51  ;;  %v5958_v51 = vld [vmem:[%s8129_s5 + $0x980] ss:$28 sps:$4 sm:$0xff]  }
 0x2b4   :  { %5333 = vmatpush3.bf16.msra.mxu0 %v5894_v52  ;;  %4368 = vmatprep.subr.bf16.mxu1 %v5897_v53  ;;  %v5955_v52 = vld [vmem:[%s8129_s5 + $0x438] ss:$28 sps:$4 sm:$0xff]   ;;  %v5959_v53 = vld [vmem:[%s8129_s5 + $0x7c0] ss:$28 sps:$4 sm:$0xff]  }
 0x2b5   :  { %5334 = vmatprep.subr.bf16.mxu0 %v5898_v55  ;;  %v5962_v55 = vld [vmem:[%s8129_s5 + $0x474] ss:$28 sps:$4 sm:$0xff]  }
 0x2b7   :  { %4369 = vmatpush1.bf16.msra.mxu1 %v5895_v56  ;;  %v5963_v56 = vld [vmem:[%s8129_s5 + $0x9b8] ss:$28 sps:$4 sm:$0xff]  }
 0x2b8   :  { %5335 = vmatpush3.bf16.msra.mxu0 %v5899_v58  ;;  %4370 = vmatprep.subr.bf16.mxu1 %v5902_v59  ;;  %v5960_v58 = vld [vmem:[%s8129_s5 + $0x470] ss:$28 sps:$4 sm:$0xff]   ;;  %v5964_v59 = vld [vmem:[%s8129_s5 + $0x7f8] ss:$28 sps:$4 sm:$0xff]  }
 0x2b9   :  { %5342 = vmatprep.subr.bf16.mxu0 %v5903_v0  ;;  %v5967_v0 = vld [vmem:[%s8129_s5 + $0x4ac] ss:$28 sps:$4 sm:$0xff]  }
 0x2bb   :  { %4551 = vmatmul.mubr.bf16.vlgmr.msra.gmra.mrb[20].mxu0 %v6875_v4  ;;  %4371 = vmatpush1.bf16.msra.mxu1 %v5900_v5  ;;  %v5968_v5 = vld [vmem:[%s8129_s5 + $0x9f0] ss:$28 sps:$4 sm:$0xff]  }
 0x2bc   :  { %5343 = vmatpush3.bf16.msra.mxu0 %v5904_v6  ;;  %4590 = vmatprep.mubr.bf16.mxu0 %v7080_v26  ;;  %v5965_v6 = vld [vmem:[%s8129_s5 + $0x4a8] ss:$28 sps:$4 sm:$0xff]  }
 0x2bd   :  { %4372 = vmatprep.subr.bf16.mxu1 %v5907_v7  ;;  %5344 = vmatprep.subr.bf16.mxu0 %v5908_v8  ;;  %v5969_v7 = vld [vmem:[%s8129_s5 + $0x830] ss:$28 sps:$4 sm:$0xff]   ;;  %v5972_v8 = vld [vmem:[%s8129_s5 + $0x4e4] ss:$28 sps:$4 sm:$0xff]  }
 0x2bf   :  { %4373 = vmatpush1.bf16.msra.mxu1 %v5905_v9  ;;  %v5973_v9 = vld [vmem:[%s8129_s5 + $0xa28] ss:$28 sps:$4 sm:$0xff]  }
 0x2c0   :  { %5345 = vmatpush3.bf16.msra.mxu0 %v5909_v10  ;;  %4374 = vmatprep.subr.bf16.mxu1 %v5912_v11  ;;  %v5970_v10 = vld [vmem:[%s8129_s5 + $0x4e0] ss:$28 sps:$4 sm:$0xff]   ;;  %v5974_v11 = vld [vmem:[%s8129_s5 + $0x868] ss:$28 sps:$4 sm:$0xff]  }
 0x2c1   :  { %5346 = vmatprep.subr.bf16.mxu0 %v5913_v50  ;;  %v5977_v50 = vld [vmem:[%s8129_s5 + $0x51c] ss:$28 sps:$4 sm:$0xff]  }
 0x2c3   :  { %4375 = vmatpush1.bf16.msra.mxu1 %v5910_v12  ;;  %v5978_v12 = vld [vmem:[%s8129_s5 + $0xa60] ss:$28 sps:$4 sm:$0xff]  }
 0x2c4   :  { %5347 = vmatpush3.bf16.msra.mxu0 %v5914_v13  ;;  %4376 = vmatprep.subr.bf16.mxu1 %v5917_v14  ;;  %v5975_v13 = vld [vmem:[%s8129_s5 + $0x518] ss:$28 sps:$4 sm:$0xff]   ;;  %v5979_v14 = vld [vmem:[%s8129_s5 + $0x8a0] ss:$28 sps:$4 sm:$0xff]  }
 0x2c5   :  { %5348 = vmatprep.subr.bf16.mxu0 %v5918_v15  ;;  %v5982_v15 = vld [vmem:[%s8129_s5 + $0x554] ss:$28 sps:$4 sm:$0xff]  }
 0x2c7   :  { %4377 = vmatpush1.bf16.msra.mxu1 %v5915_v45  ;;  %v5983_v45 = vld [vmem:[%s8129_s5 + $0xc58] ss:$28 sps:$4 sm:$0xff]  }
 0x2c8   :  { %5349 = vmatpush3.bf16.msra.mxu0 %v5919_v16  ;;  %4378 = vmatprep.subr.bf16.mxu1 %v5922_v17  ;;  %v5980_v16 = vld [vmem:[%s8129_s5 + $0x550] ss:$28 sps:$4 sm:$0xff]   ;;  %v5984_v17 = vld [vmem:[%s8129_s5 + $0xa98] ss:$28 sps:$4 sm:$0xff]  }
 0x2c9   :  { %5350 = vmatprep.subr.bf16.mxu0 %v5923_v18  ;;  %v5987_v18 = vld [vmem:[%s8129_s5 + $0x58c] ss:$28 sps:$4 sm:$0xff]  }
 0x2cb   :  { %4379 = vmatpush1.bf16.msra.mxu1 %v5920_v19  ;;  %v5988_v19 = vld [vmem:[%s8129_s5 + $0xc90] ss:$28 sps:$4 sm:$0xff]  }
 0x2cc   :  { %5351 = vmatpush3.bf16.msra.mxu0 %v5924_v41  ;;  %4380 = vmatprep.subr.bf16.mxu1 %v5927_v40  ;;  %v5985_v41 = vld [vmem:[%s8129_s5 + $0x588] ss:$28 sps:$4 sm:$0xff]   ;;  %v5989_v40 = vld [vmem:[%s8129_s5 + $0xad0] ss:$28 sps:$4 sm:$0xff]  }
 0x2cd   :  { %5352 = vmatprep.subr.bf16.mxu0 %v5928_v57  ;;  %v5992_v57 = vld [vmem:[%s8129_s5 + $0x5c4] ss:$28 sps:$4 sm:$0xff]  }
 0x2cf   :  { %4381 = vmatpush1.bf16.msra.mxu1 %v5925_v21  ;;  %v5993_v21 = vld [vmem:[%s8129_s5 + $0xcc8] ss:$28 sps:$4 sm:$0xff]  }
 0x2d0   :  { %5353 = vmatpush3.bf16.msra.mxu0 %v5929_v23  ;;  %4382 = vmatprep.subr.bf16.mxu1 %v5932_v28  ;;  %v5990_v23 = vld [vmem:[%s8129_s5 + $0x5c0] ss:$28 sps:$4 sm:$0xff]   ;;  %v5994_v28 = vld [vmem:[%s8129_s5 + $0xb08] ss:$28 sps:$4 sm:$0xff]  }
 0x2d1   :  { %5354 = vmatprep.subr.bf16.mxu0 %v5933_v30  ;;  %v5997_v30 = vld [vmem:[%s8129_s5 + $0x5fc] ss:$28 sps:$4 sm:$0xff]  }
 0x2d3   :  { %4383 = vmatpush1.bf16.msra.mxu1 %v5930_v32  ;;  %v5998_v32 = vld [vmem:[%s8129_s5 + $0xd00] ss:$28 sps:$4 sm:$0xff]  }
 0x2d4   :  { %5355 = vmatpush3.bf16.msra.mxu0 %v5934_v33  ;;  %4384 = vmatprep.subr.bf16.mxu1 %v5937_v34  ;;  %v5995_v33 = vld [vmem:[%s8129_s5 + $0x5f8] ss:$28 sps:$4 sm:$0xff]   ;;  %v5999_v34 = vld [vmem:[%s8129_s5 + $0xb40] ss:$28 sps:$4 sm:$0xff]  }
 0x2d5   :  { %5356 = vmatprep.subr.bf16.mxu0 %v5938_v1  ;;  %v6002_v1 = vld [vmem:[%s8129_s5 + $0x634] ss:$28 sps:$4 sm:$0xff]  }
 0x2d7   :  { %4385 = vmatpush1.bf16.msra.mxu1 %v5935_v35  ;;  %v6003_v35 = vld [vmem:[%s8129_s5 + $0xd38] ss:$28 sps:$4 sm:$0xff]  }
 0x2d8   :  { %5357 = vmatpush3.bf16.msra.mxu0 %v5939_v36  ;;  %4395 = vmatprep.subr.bf16.mxu1 %v5942_v37  ;;  %v6000_v36 = vld [vmem:[%s8129_s5 + $0x630] ss:$28 sps:$4 sm:$0xff]   ;;  %v6004_v37 = vld [vmem:[%s8129_s5 + $0xb78] ss:$28 sps:$4 sm:$0xff]  }
 0x2d9   :  { %5364 = vmatprep.subr.bf16.mxu0 %v5943_v38  ;;  %v6007_v38 = vld [vmem:[%s8129_s5 + $0x66c] ss:$28 sps:$4 sm:$0xff]  }
 0x2da   :  { %4387 = vmatmul.mubr.bf16.vlgmr.msra.gmra.mrb[8].mxu1 %v6875_v4  ;;  %v5952_v4 = vld [vmem:[%s8129_s5 + $0x404] ss:$28 sps:$4 sm:$0xff]  }
 0x2db   :  { %4591 = vmatmul.mubr.bf16.vlgmr.msra.gmra.mrb[24].mxu0 %v7085_v29  ;;  %4396 = vmatpush1.bf16.msra.mxu1 %v5940_v39  ;;  %v6008_v39 = vld [vmem:[%s8129_s5 + $0xd70] ss:$28 sps:$4 sm:$0xff]  }
 0x2dc   :  { %4427 = vmatprep.mubr.bf16.mxu1 %v7080_v26  ;;  %5365 = vmatpush3.bf16.msra.mxu0 %v5944_v42  ;;  %v5950_v26 = vld [vmem:[%s8129_s5 + $0x400] ss:$28 sps:$4 sm:$0xff]   ;;  %v6005_v42 = vld [vmem:[%s8129_s5 + $0x668] ss:$28 sps:$4 sm:$0xff]  }
 0x2dd   :  { %4630 = vmatprep.mubr.bf16.mxu0 %v7090_v31  ;;  %4397 = vmatprep.subr.bf16.mxu1 %v5947_v43  ;;  %v6009_v43 = vld [vmem:[%s8129_s5 + $0xbb0] ss:$28 sps:$4 sm:$0xff]  }
 0x2de   :  { %5366 = vmatprep.subr.bf16.mxu0 %v5948_v44  ;;  %v6012_v44 = vld [vmem:[%s8129_s5 + $0x6a4] ss:$28 sps:$4 sm:$0xff]  }
 0x2df   :  { %4398 = vmatpush1.bf16.msra.mxu1 %v5945_v46  ;;  %v6013_v46 = vld [vmem:[%s8129_s5 + $0xda8] ss:$28 sps:$4 sm:$0xff]  }
 0x2e0   :  { %5367 = vmatpush3.bf16.msra.mxu0 %v5949_v47  ;;  %4399 = vmatprep.subr.bf16.mxu1 %v5952_v4  ;;  %v6010_v47 = vld [vmem:[%s8129_s5 + $0x6a0] ss:$28 sps:$4 sm:$0xff]   ;;  %v6014_v4 = vld [vmem:[%s8129_s5 + $0xbe8] ss:$28 sps:$4 sm:$0xff]  }
 0x2e1   :  { %5368 = vmatprep.subr.bf16.mxu0 %v5953_v48  ;;  %v6017_v48 = vld [vmem:[%s8129_s5 + $0x6dc] ss:$28 sps:$4 sm:$0xff]  }
 0x2e3   :  { %4400 = vmatpush1.bf16.msra.mxu1 %v5950_v26  ;;  %v6018_v26 = vld [vmem:[%s8129_s5 + $0xde0] ss:$28 sps:$4 sm:$0xff]  }
 0x2e4   :  { %5369 = vmatpush3.bf16.msra.mxu0 %v5954_v54  ;;  %4401 = vmatprep.subr.bf16.mxu1 %v5957_v49  ;;  %v6015_v54 = vld [vmem:[%s8129_s5 + $0x6d8] ss:$28 sps:$4 sm:$0xff]   ;;  %v6019_v49 = vld [vmem:[%s8129_s5 + $0xc20] ss:$28 sps:$4 sm:$0xff]  }
 0x2e5   :  { %5370 = vmatprep.subr.bf16.mxu0 %v5958_v51  ;;  %v6022_v51 = vld [vmem:[%s8129_s5 + $0x714] ss:$28 sps:$4 sm:$0xff]  }
 0x2e7   :  { %4402 = vmatpush1.bf16.msra.mxu1 %v5955_v52  ;;  %v6020_v52 = vld [vmem:[%s8129_s5 + $0x710] ss:$28 sps:$4 sm:$0xff]  }
 0x2e8   :  { %5371 = vmatpush3.bf16.msra.mxu0 %v5959_v53  ;;  %4403 = vmatprep.subr.bf16.mxu1 %v5962_v55  ;;  %v6025_v53 = vld [vmem:[%s8129_s5 + $0x74c] ss:$28 sps:$4 sm:$0xff]  }
 0x2e9   :  { %5372 = vmatprep.subr.bf16.mxu0 %v5963_v56  ;;  %v6023_v55 = vld [vmem:[%s8129_s5 + $0x748] ss:$28 sps:$4 sm:$0xff]  }
 0x2ea   :  { %v6028_v56 = vld [vmem:[%s8129_s5 + $0x784] ss:$28 sps:$4 sm:$0xff]  }
 0x2eb   :  { %4404 = vmatpush1.bf16.msra.mxu1 %v5960_v58  ;;  %v6026_v58 = vld [vmem:[%s8129_s5 + $0x780] ss:$28 sps:$4 sm:$0xff]  }
 0x2ec   :  { %5373 = vmatpush3.bf16.msra.mxu0 %v5964_v59  ;;  %4405 = vmatprep.subr.bf16.mxu1 %v5967_v0  ;;  %v6034_v59 = vld [vmem:[%s8129_s5 + $0x7f4] ss:$28 sps:$4 sm:$0xff]  }
 0x2ed   :  { %5374 = vmatprep.subr.bf16.mxu0 %v5968_v5  ;;  %v6032_v0 = vld [vmem:[%s8129_s5 + $0x7f0] ss:$28 sps:$4 sm:$0xff]  }
 0x2ee   :  { %v6037_v5 = vld [vmem:[%s8129_s5 + $0x82c] ss:$28 sps:$4 sm:$0xff]  }
 0x2ef   :  { %4406 = vmatpush1.bf16.msra.mxu1 %v5965_v6  ;;  %v6035_v6 = vld [vmem:[%s8129_s5 + $0x828] ss:$28 sps:$4 sm:$0xff]  }
 0x2f0   :  { %5375 = vmatpush3.bf16.msra.mxu0 %v5969_v7  ;;  %4407 = vmatprep.subr.bf16.mxu1 %v5972_v8  ;;  %v6040_v7 = vld [vmem:[%s8129_s5 + $0x864] ss:$28 sps:$4 sm:$0xff]  }
 0x2f1   :  { %5376 = vmatprep.subr.bf16.mxu0 %v5973_v9  ;;  %v6038_v8 = vld [vmem:[%s8129_s5 + $0x860] ss:$28 sps:$4 sm:$0xff]  }
 0x2f2   :  { %v6043_v9 = vld [vmem:[%s8129_s5 + $0x89c] ss:$28 sps:$4 sm:$0xff]  }
 0x2f3   :  { %4408 = vmatpush1.bf16.msra.mxu1 %v5970_v10  ;;  %v6041_v10 = vld [vmem:[%s8129_s5 + $0x898] ss:$28 sps:$4 sm:$0xff]  }
 0x2f4   :  { %5377 = vmatpush3.bf16.msra.mxu0 %v5974_v11  ;;  %4409 = vmatprep.subr.bf16.mxu1 %v5977_v50  ;;  %v6046_v11 = vld [vmem:[%s8129_s5 + $0x8d4] ss:$28 sps:$4 sm:$0xff]  }
 0x2f5   :  { %5378 = vmatprep.subr.bf16.mxu0 %v5978_v12  ;;  %v6044_v50 = vld [vmem:[%s8129_s5 + $0x8d0] ss:$28 sps:$4 sm:$0xff]  }
 0x2f6   :  { %v6049_v12 = vld [vmem:[%s8129_s5 + $0x90c] ss:$28 sps:$4 sm:$0xff]  }
 0x2f7   :  { %4410 = vmatpush1.bf16.msra.mxu1 %v5975_v13  ;;  %v6047_v13 = vld [vmem:[%s8129_s5 + $0x908] ss:$28 sps:$4 sm:$0xff]  }
 0x2f8   :  { %5379 = vmatpush3.bf16.msra.mxu0 %v5979_v14  ;;  %4411 = vmatprep.subr.bf16.mxu1 %v5982_v15  ;;  %v6052_v14 = vld [vmem:[%s8129_s5 + $0x944] ss:$28 sps:$4 sm:$0xff]  }
 0x2f9   :  { %5386 = vmatprep.subr.bf16.mxu0 %v5983_v45  ;;  %v6050_v15 = vld [vmem:[%s8129_s5 + $0x940] ss:$28 sps:$4 sm:$0xff]  }
 0x2fa   :  { %v6055_v45 = vld [vmem:[%s8129_s5 + $0x97c] ss:$28 sps:$4 sm:$0xff]  }
 0x2fb   :  { %4631 = vmatmul.mubr.bf16.vlgmr.msra.gmra.mrb[28].mxu0 %v7296_v60  ;;  %4412 = vmatpush1.bf16.msra.mxu1 %v5980_v16  ;;  %v6053_v16 = vld [vmem:[%s8129_s5 + $0x978] ss:$28 sps:$4 sm:$0xff]  }
 0x2fc   :  { %5387 = vmatpush3.bf16.msra.mxu0 %v5984_v17  ;;  %4670 = vmatprep.mubr.bf16.mxu0 %v7304_v3  ;;  %v6058_v17 = vld [vmem:[%s8129_s5 + $0x9b4] ss:$28 sps:$4 sm:$0xff]  }
 0x2fd   :  { %4413 = vmatprep.subr.bf16.mxu1 %v5987_v18  ;;  %5388 = vmatprep.subr.bf16.mxu0 %v5988_v19  ;;  %v6056_v18 = vld [vmem:[%s8129_s5 + $0x9b0] ss:$28 sps:$4 sm:$0xff]  }
 0x2fe   :  { %v6061_v19 = vld [vmem:[%s8129_s5 + $0x9ec] ss:$28 sps:$4 sm:$0xff]  }
 0x2ff   :  { %4414 = vmatpush1.bf16.msra.mxu1 %v5985_v41  ;;  %v6059_v41 = vld [vmem:[%s8129_s5 + $0x9e8] ss:$28 sps:$4 sm:$0xff]  }
 0x300   :  { %5389 = vmatpush3.bf16.msra.mxu0 %v5989_v40  ;;  %4415 = vmatprep.subr.bf16.mxu1 %v5992_v57  ;;  %v6064_v40 = vld [vmem:[%s8129_s5 + $0xa24] ss:$28 sps:$4 sm:$0xff]  }
 0x301   :  { %5390 = vmatprep.subr.bf16.mxu0 %v5993_v21  ;;  %v6062_v57 = vld [vmem:[%s8129_s5 + $0xa20] ss:$28 sps:$4 sm:$0xff]  }
 0x302   :  { %v6067_v21 = vld [vmem:[%s8129_s5 + $0xa5c] ss:$28 sps:$4 sm:$0xff]  }
 0x303   :  { %4416 = vmatpush1.bf16.msra.mxu1 %v5990_v23  ;;  %v6065_v23 = vld [vmem:[%s8129_s5 + $0xa58] ss:$28 sps:$4 sm:$0xff]  }
 0x304   :  { %5391 = vmatpush3.bf16.msra.mxu0 %v5994_v28  ;;  %4417 = vmatprep.subr.bf16.mxu1 %v5997_v30  ;;  %v6070_v28 = vld [vmem:[%s8129_s5 + $0xa94] ss:$28 sps:$4 sm:$0xff]  }
 0x305   :  { %5392 = vmatprep.subr.bf16.mxu0 %v5998_v32  ;;  %v6068_v30 = vld [vmem:[%s8129_s5 + $0xa90] ss:$28 sps:$4 sm:$0xff]  }
 0x306   :  { %v6073_v32 = vld [vmem:[%s8129_s5 + $0xacc] ss:$28 sps:$4 sm:$0xff]  }
 0x307   :  { %4418 = vmatpush1.bf16.msra.mxu1 %v5995_v33  ;;  %v6071_v33 = vld [vmem:[%s8129_s5 + $0xac8] ss:$28 sps:$4 sm:$0xff]  }
 0x308   :  { %5393 = vmatpush3.bf16.msra.mxu0 %v5999_v34  ;;  %4419 = vmatprep.subr.bf16.mxu1 %v6002_v1  ;;  %v6076_v34 = vld [vmem:[%s8129_s5 + $0xb04] ss:$28 sps:$4 sm:$0xff]  }
 0x309   :  { %5394 = vmatprep.subr.bf16.mxu0 %v6003_v35  ;;  %v6074_v1 = vld [vmem:[%s8129_s5 + $0xb00] ss:$28 sps:$4 sm:$0xff]   ;;  %v6082_v35 = vld [vmem:[%s8129_s5 + $0xb74] ss:$28 sps:$4 sm:$0xff]  }
 0x30b   :  { %4420 = vmatpush1.bf16.msra.mxu1 %v6000_v36  ;;  %v6080_v36 = vld [vmem:[%s8129_s5 + $0xb70] ss:$28 sps:$4 sm:$0xff]  }
 0x30c   :  { %5395 = vmatpush3.bf16.msra.mxu0 %v6004_v37  ;;  %4421 = vmatprep.subr.bf16.mxu1 %v6007_v38  ;;  %v8024_v37 = vld [vmem:[%s8130_s6] sm:$0x7f]  ;;  %v6085_v38 = vld [vmem:[%s8129_s5 + $0xbac] ss:$28 sps:$4 sm:$0xff]  }
 0x30d   :  { %5396 = vmatprep.subr.bf16.mxu0 %v6008_v39  ;;  %v1690_v39 = vrot.slane %v8024_v37, %v6448_v25  ;;  %v6088_v25 = vld [vmem:[%s8129_s5 + $0xbe4] ss:$28 sps:$4 sm:$0xff]  }
 0x30f   :  { %4422 = vmatpush1.bf16.msra.mxu1 %v6005_v42  ;;  %v1698_v42 = vrot.slane %v8024_v37, %v323_v62 }
 0x310   :  { %5397 = vmatpush3.bf16.msra.mxu0 %v6009_v43  ;;  %4423 = vmatprep.subr.bf16.mxu1 %v6012_v44  ;;  %v1694_v43 = vrot.slane %v8024_v37, %v6454_v27  ;;  %v6083_v44 = vld [vmem:[%s8129_s5 + $0xba8] ss:$28 sps:$4 sm:$0xff]  }
 0x311   :  { %5398 = vmatprep.subr.bf16.mxu0 %v6013_v46  ;;  %v1702_v46 = vrot.slane %v8024_v37, %v327_v2 }
 0x313   :  { %4424 = vmatpush1.bf16.msra.mxu1 %v6010_v47 }
 0x314   :  { %5399 = vmatpush3.bf16.msra.mxu0 %v6014_v4  ;;  %4425 = vmatprep.subr.bf16.mxu1 %v6017_v48 }
 0x315   :  { %5400 = vmatprep.subr.bf16.mxu0 %v6018_v26 }
 0x317   :  { %4426 = vmatpush1.bf16.msra.mxu1 %v6015_v54 }
 0x318   :  { %5401 = vmatpush3.bf16.msra.mxu0 %v6019_v49  ;;  %4436 = vmatprep.subr.bf16.mxu1 %v6022_v51  ;;  %v6086_v51 = vld [vmem:[%s8129_s5 + $0xbe0] ss:$28 sps:$4 sm:$0xff]  }
 0x31a   :  { %4428 = vmatmul.mubr.bf16.vlgmr.msra.gmra.mrb[8].mxu1 %v7085_v29  ;;  %v6031_v29 = vld [vmem:[%s8129_s5 + $0x7bc] ss:$28 sps:$4 sm:$0xff]  }
 0x31b   :  { %4671 = vmatmul.mubr.bf16.vlgmr.msra.gmra.mrb[32].mxu0 %v7501_v20  ;;  %4437 = vmatpush1.bf16.msra.mxu1 %v6020_v52 }
 0x31c   :  { %4468 = vmatprep.mubr.bf16.mxu1 %v7090_v31  ;;  %4438 = vmatprep.subr.bf16.mxu1 %v6025_v53  ;;  %v6029_v31 = vld [vmem:[%s8129_s5 + $0x7b8] ss:$28 sps:$4 sm:$0xff]  }
 0x31f   :  { %4439 = vmatpush1.bf16.msra.mxu1 %v6023_v55 }
 0x320   :  { %4440 = vmatprep.subr.bf16.mxu1 %v6028_v56  ;;  %v6091_v56 = vld [vmem:[%s8129_s5 + $0xc1c] ss:$28 sps:$4 sm:$0xff]  }
 0x323   :  { %4441 = vmatpush1.bf16.msra.mxu1 %v6026_v58 }
 0x324   :  { %4442 = vmatprep.subr.bf16.mxu1 %v6031_v29 }
 0x327   :  { %4443 = vmatpush1.bf16.msra.mxu1 %v6029_v31 }
 0x328   :  { %4444 = vmatprep.subr.bf16.mxu1 %v6034_v59 }
 0x32b   :  { %4445 = vmatpush1.bf16.msra.mxu1 %v6032_v0  ;;  %v6089_v0 = vld [vmem:[%s8129_s5 + $0xc18] ss:$28 sps:$4 sm:$0xff]  }
 0x32c   :  { %4446 = vmatprep.subr.bf16.mxu1 %v6037_v5  ;;  %v6094_v5 = vld [vmem:[%s8129_s5 + $0xc54] ss:$28 sps:$4 sm:$0xff]  }
 0x32f   :  { %4447 = vmatpush1.bf16.msra.mxu1 %v6035_v6  ;;  %v6092_v6 = vld [vmem:[%s8129_s5 + $0xc50] ss:$28 sps:$4 sm:$0xff]  }
 0x330   :  { %4448 = vmatprep.subr.bf16.mxu1 %v6040_v7  ;;  %v6097_v7 = vld [vmem:[%s8129_s5 + $0xc8c] ss:$28 sps:$4 sm:$0xff]  }
 0x333   :  { %4449 = vmatpush1.bf16.msra.mxu1 %v6038_v8  ;;  %v6095_v8 = vld [vmem:[%s8129_s5 + $0xc88] ss:$28 sps:$4 sm:$0xff]  }
 0x334   :  { %4450 = vmatprep.subr.bf16.mxu1 %v6043_v9 }
 0x337   :  { %4451 = vmatpush1.bf16.msra.mxu1 %v6041_v10  ;;  %v6100_v10 = vld [vmem:[%s8129_s5 + $0xcc4] ss:$28 sps:$4 sm:$0xff]  }
 0x338   :  { %4452 = vmatprep.subr.bf16.mxu1 %v6046_v11 }
 0x33b   :  { %4453 = vmatpush1.bf16.msra.mxu1 %v6044_v50 }
 0x33c   :  { %4454 = vmatprep.subr.bf16.mxu1 %v6049_v12 }
 0x33f   :  { %4455 = vmatpush1.bf16.msra.mxu1 %v6047_v13 }
 0x340   :  { %4456 = vmatprep.subr.bf16.mxu1 %v6052_v14 }
 0x343   :  { %4457 = vmatpush1.bf16.msra.mxu1 %v6050_v15 }
 0x344   :  { %4458 = vmatprep.subr.bf16.mxu1 %v6055_v45 }
 0x347   :  { %4459 = vmatpush1.bf16.msra.mxu1 %v6053_v16  ;;  %v6098_v16 = vld [vmem:[%s8129_s5 + $0xcc0] ss:$28 sps:$4 sm:$0xff]  }
 0x348   :  { %4460 = vmatprep.subr.bf16.mxu1 %v6058_v17 }
 0x34b   :  { %4461 = vmatpush1.bf16.msra.mxu1 %v6056_v18 }
 0x34c   :  { %4462 = vmatprep.subr.bf16.mxu1 %v6061_v19  ;;  %v6103_v19 = vld [vmem:[%s8129_s5 + $0xcfc] ss:$28 sps:$4 sm:$0xff]  }
 0x34f   :  { %4463 = vmatpush1.bf16.msra.mxu1 %v6059_v41 }
 0x350   :  { %4464 = vmatprep.subr.bf16.mxu1 %v6064_v40 }
 0x353   :  { %4465 = vmatpush1.bf16.msra.mxu1 %v6062_v57  ;;  %v6101_v57 = vld [vmem:[%s8129_s5 + $0xcf8] ss:$28 sps:$4 sm:$0xff]  }
 0x354   :  { %4466 = vmatprep.subr.bf16.mxu1 %v6067_v21  ;;  %v6106_v21 = vld [vmem:[%s8129_s5 + $0xd34] ss:$28 sps:$4 sm:$0xff]  }
 0x357   :  { %4467 = vmatpush1.bf16.msra.mxu1 %v6065_v23  ;;  %v6104_v23 = vld [vmem:[%s8129_s5 + $0xd30] ss:$28 sps:$4 sm:$0xff]  }
 0x358   :  { %4477 = vmatprep.subr.bf16.mxu1 %v6070_v28  ;;  %v6109_v28 = vld [vmem:[%s8129_s5 + $0xd6c] ss:$28 sps:$4 sm:$0xff]  }
 0x35a   :  { %4469 = vmatmul.mubr.bf16.vlgmr.msra.gmra.mrb[8].mxu1 %v7296_v60  ;;  %v6079_v60 = vld [vmem:[%s8129_s5 + $0xb3c] ss:$28 sps:$4 sm:$0xff]  }
 0x35b   :  { %4478 = vmatpush1.bf16.msra.mxu1 %v6068_v30  ;;  %4509 = vmatprep.mubr.bf16.mxu1 %v7304_v3  ;;  %v6077_v3 = vld [vmem:[%s8129_s5 + $0xb38] ss:$28 sps:$4 sm:$0xff]   ;;  %v6107_v30 = vld [vmem:[%s8129_s5 + $0xd68] ss:$28 sps:$4 sm:$0xff]  }
 0x35c   :  { %4479 = vmatprep.subr.bf16.mxu1 %v6073_v32  ;;  %v6112_v32 = vld [vmem:[%s8129_s5 + $0xda4] ss:$28 sps:$4 sm:$0xff]  }
 0x35f   :  { %4480 = vmatpush1.bf16.msra.mxu1 %v6071_v33 }
 0x360   :  { %4481 = vmatprep.subr.bf16.mxu1 %v6076_v34 }
 0x363   :  { %4482 = vmatpush1.bf16.msra.mxu1 %v6074_v1  ;;  %v6110_v1 = vld [vmem:[%s8129_s5 + $0xda0] ss:$28 sps:$4 sm:$0xff]  }
 0x364   :  { %4483 = vmatprep.subr.bf16.mxu1 %v6079_v60 }
 0x367   :  { %4484 = vmatpush1.bf16.msra.mxu1 %v6077_v3 }
 0x368   :  { %4485 = vmatprep.subr.bf16.mxu1 %v6082_v35  ;;  %v6115_v35 = vld [vmem:[%s8129_s5 + $0xddc] ss:$28 sps:$4 sm:$0xff]  }
 0x36b   :  { %4486 = vmatpush1.bf16.msra.mxu1 %v6080_v36 }
 0x36c   :  { %4487 = vmatprep.subr.bf16.mxu1 %v6085_v38  ;;  %v6113_v38 = vld [vmem:[%s8129_s5 + $0xdd8] ss:$28 sps:$4 sm:$0xff]   ;;  %s6155_s5 = smov [#allocation2]  }
 0x36d   :  { %v4183_v47 = vpop.f32.mrb[4].mxu1  ;;  %s4720_s2 = sshll.u32 %s6155_s5, 4  ;;  %s4721_s2 = int_to_ptr.vmem [resolvable:$true] %s4720_s2 }
 0x36e   :  { %v5408_v4 = vadd.f32 %v4183_v47, %v1690_v39  ;;  %v4347_v48 = vpop.f32.mrb[16].mxu0  ;;  %v4185_v62 = vpop.f32.mrb[5].mxu1  ;;  %v1714_v39 = vrot.slane %v8024_v37, %v339_v63  ;;  %s6130_s23 = scalar_lea.vmem %s4721_s2, 896  ;;  %p6135_p1 = scmp.lt.s32.totalorder %s4721_s2, %s4721_s2 }
 0x36f   :  { %v5410_v26 = vadd.f32 %v4347_v48, %v1698_v42  ;;  %v5409_v54 = vadd.f32 %v4185_v62, %v1694_v43  ;;  %v4349_v27 = vpop.f32.mrb[17].mxu0  ;;  %v4187_v49 = vpop.f32.mrb[6].mxu1  ;;  %4488 = vmatpush1.bf16.msra.mxu1 %v6083_v44  ;;  %p6131_p0 = scmp.ne.s32.totalorder %s4721_s2, %s6130_s23  ;;  %p6136_p2 = scmp.lt.s32.totalorder %s6130_s23, %s6130_s23 }
 0x370   :  { %v4678_v52 = vmul.f32 0.5, %v5408_v4  ;;  %v5411_v2 = vadd.f32 %v4349_v27, %v1702_v46  ;;  %v4351_v53 = vpop.f32.mrb[18].mxu0  ;;  %v4188_v55 = vpop.f32.mrb[7].mxu1  ;;  %4489 = vmatprep.subr.bf16.mxu1 %v6088_v25 }
 0x371   :  { %v4680_v58 = vmul.f32 0.5, %v5410_v26  ;;  %v4679_v29 = vmul.f32 0.5, %v5409_v54  ;;  %v4352_v31 = vpop.f32.mrb[19].mxu0  ;;  %p6137_p3 = por %p6136_p2, %p6135_p1 }
 0x372   :  { %6116 = vtanh.f32 %v4678_v52  ;;  %v4681_v59 = vmul.f32 0.5, %v5411_v2  ;;  %v1706_v31 = vrot.slane %v8024_v37, %v331_v22 }
 0x373   :  { %6118 = vtanh.f32 %v4680_v58  ;;  %4490 = vmatpush1.bf16.msra.mxu1 %v6086_v51  ;;  %p6138_p4 = pnand %p6137_p3, %p6131_p0 }
 0x374   :  { %6120 = vtanh.f32 %v4679_v29  ;;  %4491 = vmatprep.subr.bf16.mxu1 %v6091_v56 }
 0x375   :  { %6122 = vtanh.f32 %v4681_v59  ;;  %v1710_v59 = vrot.slane %v8024_v37, %v335_v61 }
 0x377   :  { %4492 = vmatpush1.bf16.msra.mxu1 %v6089_v0 }
 0x378   :  { %4493 = vmatprep.subr.bf16.mxu1 %v6094_v5 }
 0x37b   :  { %4494 = vmatpush1.bf16.msra.mxu1 %v6092_v6 }
 0x37c   :  { %v6117_v9 = vpop.eup %6116  ;;  %4495 = vmatprep.subr.bf16.mxu1 %v6097_v7 }
 0x37d   :  { %v6119_v11 = vpop.eup %6118  ;;  %v4692_v50 = vmul.f32 0.5, %v6117_v9 }
 0x37e   :  { %v6121_v12 = vpop.eup %6120  ;;  %v4694_v13 = vmul.f32 0.5, %v6119_v11 }
 0x37f   :  { %v6123_v14 = vpop.eup %6122  ;;  %v4699_v15 = vadd.f32 0.5, %v4692_v50  ;;  %v4693_v45 = vmul.f32 0.5, %v6121_v12  ;;  %4496 = vmatpush1.bf16.msra.mxu1 %v6095_v8 }
 0x380   :  { %v4701_v17 = vadd.f32 0.5, %v4694_v13  ;;  %v4695_v18 = vmul.f32 0.5, %v6123_v14  ;;  %4497 = vmatprep.subr.bf16.mxu1 %v6100_v10 }
 0x381   :  { %4706 = vst [vmem:[#allocation2] sm:$0xff] %v4699_v15  ;;  %v4700_v41 = vadd.f32 0.5, %v4693_v45 }
 0x382   :  { %4708 = vst [vmem:[#allocation2 + $0x10] sm:$0xff] %v4701_v17  ;;  %v4702_v40 = vadd.f32 0.5, %v4695_v18 }
 0x383   :  { %4707 = vst [vmem:[#allocation2 + $0x8] sm:$0xff] %v4700_v41  ;;  %4498 = vmatpush1.bf16.msra.mxu1 %v6098_v16 }
 0x384   :  { %4709 = vst [vmem:[#allocation2 + $0x18] sm:$0xff] %v4702_v40  ;;  %4499 = vmatprep.subr.bf16.mxu1 %v6103_v19 }
 0x387   :  { %4500 = vmatpush1.bf16.msra.mxu1 %v6101_v57 }
 0x388   :  { %4501 = vmatprep.subr.bf16.mxu1 %v6106_v21 }
 0x38b   :  { %4502 = vmatpush1.bf16.msra.mxu1 %v6104_v23 }
 0x38c   :  { %4503 = vmatprep.subr.bf16.mxu1 %v6109_v28 }
 0x38e   :  { %v5336_v33 = vpop.f32.mrb[20].mxu0 }
 0x38f   :  { %v5337_v34 = vpop.f32.mrb[21].mxu0  ;;  %4504 = vmatpush1.bf16.msra.mxu1 %v6107_v30 }
 0x390   :  { %v5338_v60 = vadd.f32 %v5337_v34, %v5336_v33  ;;  %v5339_v3 = vpop.f32.mrb[22].mxu0  ;;  %4505 = vmatprep.subr.bf16.mxu1 %v6112_v32 }
 0x391   :  { %v5340_v36 = vpop.f32.mrb[23].mxu0 }
 0x392   :  { %v4553_v44 = vadd.f32 %v5338_v60, %v1714_v39 }
 0x393   :  { %4506 = vmatpush1.bf16.msra.mxu1 %v6110_v1 }
 0x394   :  { %4507 = vmatprep.subr.bf16.mxu1 %v6115_v35 }
 0x397   :  { %4508 = vmatpush1.bf16.msra.mxu1 %v6113_v38 }
 0x39a   :  { %4510 = vmatmul.mubr.bf16.vlgmr.msra.gmra.mrb[8].mxu1 %v7501_v20 }
 0x3ae   :  { %v5358_v42 = vpop.f32.mrb[24].mxu0 }
 0x3af   :  { %v5359_v43 = vpop.f32.mrb[25].mxu0 }
 0x3b0   :  { %v5360_v46 = vadd.f32 %v5359_v43, %v5358_v42  ;;  %v5361_v25 = vpop.f32.mrb[26].mxu0 }
 0x3b1   :  { %v5362_v47 = vpop.f32.mrb[27].mxu0 }
 0x3b2   :  { %v4593_v4 = vadd.f32 %v5360_v46, %v4553_v44 }
 0x3ce   :  { %v5380_v48 = vpop.f32.mrb[28].mxu0 }
 0x3cf   :  { %v5381_v62 = vpop.f32.mrb[29].mxu0 }
 0x3d0   :  { %v5382_v26 = vadd.f32 %v5381_v62, %v5380_v48  ;;  %v5383_v54 = vpop.f32.mrb[30].mxu0 }
 0x3d1   :  { %v5384_v27 = vpop.f32.mrb[31].mxu0 }
 0x3d2   :  { %v4633_v49 = vadd.f32 %v5382_v26, %v4593_v4 }
 0x3ee   :  { %v5402_v51 = vpop.f32.mrb[32].mxu0 }
 0x3ef   :  { %v5403_v52 = vpop.f32.mrb[33].mxu0 }
 0x3f0   :  { %v5404_v20 = vadd.f32 %v5403_v52, %v5402_v51  ;;  %v5405_v2 = vpop.f32.mrb[34].mxu0 }
 0x3f1   :  { %v5406_v53 = vpop.f32.mrb[35].mxu0 }
 0x3f2   :  { %v4673_v55 = vadd.f32 %v5404_v20, %v4633_v49 }
 0x3f4   :  { %v4684_v63 = vmul.f32 0.5, %v4673_v55 }
 0x3f6   :  { %6124 = vtanh.f32 %v4684_v63 }
 0x400   :  { %v6125_v56 = vpop.eup %6124 }
 0x401   :  { %v4698_v58 = vmul.f32 0.5, %v6125_v56 }
 0x403   :  { %v4705_v29 = vadd.f32 0.5, %v4698_v58 }
 0x405   :  { %4713 = vst.msk [vmem:[#allocation2 + $0x30] sm:$0xff] %vm4712_vm0, %v4705_v29 }
 0x46d   :  { %v4511_v0 = vpop.f32.mrb[8].mxu1 }
 0x46e   :  { %v5412_v5 = vadd.f32 %v4511_v0, %v1706_v31  ;;  %v4513_v6 = vpop.f32.mrb[9].mxu1 }
 0x46f   :  { %v5413_v7 = vadd.f32 %v4513_v6, %v1710_v59  ;;  %v4515_v8 = vpop.f32.mrb[10].mxu1 }
 0x470   :  { %v4682_v9 = vmul.f32 0.5, %v5412_v5  ;;  %v4516_v10 = vpop.f32.mrb[11].mxu1 }
 0x471   :  { %v4683_v11 = vmul.f32 0.5, %v5413_v7 }
 0x472   :  { %6126 = vtanh.f32 %v4682_v9 }
 0x473   :  { %6128 = vtanh.f32 %v4683_v11 }
 0x47c   :  { %v6127_v50 = vpop.eup %6126 }
 0x47d   :  { %v6129_v12 = vpop.eup %6128  ;;  %v4696_v13 = vmul.f32 0.5, %v6127_v50 }
 0x47e   :  { %v4697_v22 = vmul.f32 0.5, %v6129_v12 }
 0x47f   :  { %v4703_v14 = vadd.f32 0.5, %v4696_v13 }
 0x480   :  { %v4704_v24 = vadd.f32 0.5, %v4697_v22 }
 0x481   :  { %4710 = vst [vmem:[#allocation2 + $0x20] sm:$0xff] %v4703_v14 }
 0x482   :  { %4711 = vst [vmem:[#allocation2 + $0x28] sm:$0xff] %v4704_v24 }
 0x483   :  { %6141 = shalt.err (!%p6138_p4)
}
 0x484   :  { %s6142_s26 = scalar_lea.hbm %s8131_s7, 896 }
 0x485   :  { %p6143_p5 = scmp.ne.s32.totalorder %s8131_s7, %s6142_s26  ;;  %p6146_p6 = scmp.lt.u32.totalorder %s6142_s26, %s8131_s7 }
 0x487   :  { %p6148_p7 = pnand %p6146_p6, %p6143_p5 }
 0x489   :  { %6151 = shalt.err (!%p6148_p7)
}
 0x48a   :  { %4723 = dma.vmem_to_hbm [thread:$0]  %s4721_s2, 896, %s8131_s7, [#allocation3]  }
 0x48b   :  { %6152 = dma.done.wait [#allocation3], 896  }
 0x48c   :  { %6153 = vsyncadd [#allocation3], 4294966400 }
 0x48d   :  { %4727 = vsyncpa [#allocation3], 1 }

</bundles_post_ra>
